<compile_context>
chip_gen: v6e
topology: v6e:2x2x1
jax: 0.10.0
libtpu: 0.0.40
codegen_flags: <defaults>
</compile_context>

<pallas_src>
import functools

import numpy as np
import jax
import jax.numpy as jnp
from jax import lax
from jax.experimental import pallas as pl
from jax.experimental.pallas import tpu as pltpu

EXPANSION = 4
_EPS = 1e-5


# ---------------------------------------------------------------------------
# Kernel: conv1(1x1)+bn+relu -> conv2(3x3,pad1,stride)+bn+relu
#         -> conv3(1x1)+bn -> (+ shortcut) -> relu, one output row chunk
#         per grid step.
# ---------------------------------------------------------------------------
def _bottleneck_kernel(stride, has_shortcut, true_w,
                       x_ref, w1_ref, s1_ref, b1_ref,
                       w2_ref, s2_ref, b2_ref,
                       w3_ref, s3_ref, b3_ref,
                       *rest):
    if has_shortcut:
        wsc_ref, ssc_ref, bsc_ref, out_ref = rest
    else:
        (out_ref,) = rest

    s = stride
    _, Hp, Wp, Cin = x_ref.shape            # padded input block (1, H+2, Wp, Cin)
    H, W = Hp - 2, true_w
    P = w1_ref.shape[1]
    _, TRo, Wo, Cout = out_ref.shape        # one chunk of output rows
    TH = (TRo - 1) * s + 3                  # h1 rows needed (incl. +/-1 halo)
    rspan = (TRo - 1) * s + 1
    cspan = (Wo - 1) * s + 1
    M = TRo * Wo

    r = pl.program_id(1)
    row0 = pl.multiple_of(r * (TRo * s), TRo * s)    # first padded-h1 row

    # ---- conv1 (1x1) + bn1 + relu over the haloed row window ---------------
    xw = x_ref[0, pl.ds(row0, TH), :, :]             # (TH, Wp, Cin) bf16
    h1 = jnp.dot(xw.reshape(TH * Wp, Cin), w1_ref[...],
                 preferred_element_type=jnp.float32)
    h1 = jnp.maximum(h1 * s1_ref[...] + b1_ref[...], 0.0).reshape(TH, Wp, P)

    # conv2's zero padding applies to h1 (not to x): zero the halo ring.
    row_ids = lax.broadcasted_iota(jnp.int32, (TH, Wp, P), 0) + row0
    col_ids = lax.broadcasted_iota(jnp.int32, (TH, Wp, P), 1)
    valid = ((row_ids >= 1) & (row_ids <= H)
             & (col_ids >= 1) & (col_ids <= W))
    h1 = jnp.where(valid, h1, 0.0).astype(jnp.bfloat16)      # (TH, Wp, P)

    # ---- conv2 (3x3, pad=1, stride) + bn2 + relu ----------------------------
    # stride applied during patch gather; deep-K (3P) contraction when the
    # channel count is lane aligned, 9 K=P taps otherwise.
    deep_k = (P % 128 == 0)
    acc = jnp.zeros((M, P), jnp.float32)
    for kh in range(3):
        w2_kh = w2_ref[kh]                                   # (3P, P) bf16
        patches = [h1[kh:kh + rspan:s, kw:kw + cspan:s, :].reshape(M, P)
                   for kw in range(3)]
        if deep_k:
            op = jnp.concatenate(patches, axis=-1)           # (M, 3P)
            acc = acc + jnp.dot(op, w2_kh, preferred_element_type=jnp.float32)
        else:
            for kw in range(3):
                acc = acc + jnp.dot(patches[kw],
                                    w2_kh[kw * P:(kw + 1) * P, :],
                                    preferred_element_type=jnp.float32)
    h2 = jnp.maximum(acc * s2_ref[...] + b2_ref[...], 0.0).astype(jnp.bfloat16)

    # ---- conv3 (1x1) + bn3 --------------------------------------------------
    h3 = jnp.dot(h2, w3_ref[...], preferred_element_type=jnp.float32)
    h3 = h3 * s3_ref[...] + b3_ref[...]

    # ---- shortcut: re-read x_ref, do not keep the full window live ----------
    xs = x_ref[0, pl.ds(row0 + 1, rspan), :, :]              # (rspan, Wp, Cin)
    xs = xs[::s, 1:1 + cspan:s, :].reshape(M, Cin)           # (M, Cin) bf16
    if has_shortcut:
        sc = jnp.dot(xs, wsc_ref[...], preferred_element_type=jnp.float32)
        sc = sc * ssc_ref[...] + bsc_ref[...]
    else:
        sc = xs.astype(jnp.float32)

    out = jnp.maximum(h3 + sc, 0.0)
    out_ref[...] = out.reshape(1, TRo, Wo, Cout).astype(out_ref.dtype)


# ---------------------------------------------------------------------------
# Wrappers
# ---------------------------------------------------------------------------
def _pick_row_chunk(Ho, Wo, target_rows=512):
    """Largest divisor of Ho whose chunk is <= ~512 output rows (M = TRo*Wo)."""
    best = 1
    for t in range(1, Ho + 1):
        if Ho % t == 0 and t * Wo <= max(target_rows, Wo):
            best = t
    return best


def bottleneck_forward_nhwc(x_nhwc, params, *, stride=1, row_chunk=None):
    N, H, W, Cin = x_nhwc.shape
    P = params['w1'].shape[1]
    Cout = params['w3'].shape[1]
    Ho = (H - 1) // stride + 1
    Wo = (W - 1) // stride + 1
    has_shortcut = 'wsc' in params

    TRo = _pick_row_chunk(Ho, Wo) if row_chunk is None else int(row_chunk)
    assert Ho % TRo == 0, f"row_chunk {TRo} must divide Ho={Ho}"
    R = Ho // TRo

    # Spatial zero pad (conv2's pad=1); width rounded up to a multiple of 8 so
    # in-kernel reshapes/slices stay sublane aligned.  The padded positions are
    # re-zeroed after bn1+relu inside the kernel.  bf16 at the HBM boundary.
    Wp = ((W + 2 + 7) // 8) * 8
    Hp = H + 2
    xp = jnp.pad(x_nhwc, ((0, 0), (1, 1), (1, Wp - W - 1), (0, 0))
                 ).astype(jnp.bfloat16)

    args = [xp,
            params['w1'], params['s1'], params['b1'],
            params['w2'], params['s2'], params['b2'],
            params['w3'], params['s3'], params['b3']]
    if has_shortcut:
        args += [params['wsc'], params['ssc'], params['bsc']]

    def full_spec(a):
        ndim = a.ndim
        return pl.BlockSpec(a.shape, lambda n, r: (0,) * ndim)

    # Padded image of batch element n stays resident in VMEM across all r.
    in_specs = [pl.BlockSpec((1, Hp, Wp, Cin), lambda n, r: (n, 0, 0, 0))]
    in_specs += [full_spec(a) for a in args[1:]]
    out_spec = pl.BlockSpec((1, TRo, Wo, Cout), lambda n, r: (n, r, 0, 0))

    kernel = functools.partial(_bottleneck_kernel, stride, has_shortcut, W)

    bytes_w = sum(int(np.prod(a.shape)) * a.dtype.itemsize for a in args[1:])
    flops = 2 * N * (Hp * Wp * Cin * P
                     + Ho * Wo * 9 * P * P
                     + Ho * Wo * P * Cout)
    if has_shortcut:
        flops += 2 * N * Ho * Wo * Cin * Cout
    bytes_accessed = N * Hp * Wp * Cin * 2 + N * Ho * Wo * Cout * 4 + bytes_w
    cost = pl.CostEstimate(flops=flops, transcendentals=0,
                           bytes_accessed=bytes_accessed)

    cparams = dict(dimension_semantics=("parallel", "parallel"))
    est_vmem = 2 * (Hp * Wp * Cin * 2 + TRo * Wo * Cout * 4) + bytes_w + (2 << 20)
    if est_vmem > 28 * 1024 * 1024:          # raise scoped VMEM only if needed
        cparams['vmem_limit_bytes'] = int(min(est_vmem * 5 // 4,
                                              64 * 1024 * 1024))

    out = pl.pallas_call(
        kernel,
        out_shape=jax.ShapeDtypeStruct((N, Ho, Wo, Cout), jnp.float32),
        grid=(N, R),
        in_specs=in_specs,
        out_specs=out_spec,
        compiler_params=pltpu.CompilerParams(**cparams),
        cost_estimate=cost,
    )(*args)
    return out


def bottleneck_forward(x_nchw, params, *, stride=1, row_chunk=None):
    """NCHW in / NCHW out (PyTorch convention).  Prefer the NHWC entry point
    when chaining blocks to avoid the boundary transposes."""
    x = jnp.transpose(x_nchw, (0, 2, 3, 1))
    out = bottleneck_forward_nhwc(x, params, stride=stride, row_chunk=row_chunk)
    return jnp.transpose(out, (0, 3, 1, 2))


# ---------------------------------------------------------------------------
# Deterministic parameter construction (mirrors the PyTorch module shapes).
# Conv weights are stored in bf16 (MXU), folded BN scale/shift in f32.
# ---------------------------------------------------------------------------
def init_params(key, in_planes, planes, stride=1):
    cout = EXPANSION * planes
    keys = jax.random.split(key, 8)

    def conv_w(k, shape):
        fan_in = float(np.prod(shape[1:]))
        return jax.random.normal(k, shape, jnp.float32) / np.sqrt(fan_in)

    def bn_fold(k, c):
        kg, kb, km, kv = jax.random.split(k, 4)
        gamma = 1.0 + 0.1 * jax.random.normal(kg, (c,), jnp.float32)
        beta = 0.1 * jax.random.normal(kb, (c,), jnp.float32)
        mean = 0.1 * jax.random.normal(km, (c,), jnp.float32)
        var = 0.5 + jnp.abs(jax.random.normal(kv, (c,), jnp.float32))
        scale = gamma / jnp.sqrt(var + _EPS)
        shift = beta - mean * scale
        return scale.reshape(1, c), shift.reshape(1, c)

    # conv1: PyTorch (planes, in_planes, 1, 1) -> (Cin, P)
    w1 = jnp.transpose(conv_w(keys[0], (planes, in_planes, 1, 1))[:, :, 0, 0],
                       (1, 0)).astype(jnp.bfloat16)
    s1, b1 = bn_fold(keys[1], planes)

    # conv2: (planes, planes, 3, 3) -> taps packed along K: (3, 3P, P),
    # row block kw*P:(kw+1)*P of slice kh holds tap (kh, kw) as (in, out).
    w2 = jnp.transpose(conv_w(keys[2], (planes, planes, 3, 3)),
                       (2, 3, 1, 0)).reshape(3, 3 * planes, planes
                                             ).astype(jnp.bfloat16)
    s2, b2 = bn_fold(keys[3], planes)

    # conv3: (4P, planes, 1, 1) -> (P, 4P)
    w3 = jnp.transpose(conv_w(keys[4], (cout, planes, 1, 1))[:, :, 0, 0],
                       (1, 0)).astype(jnp.bfloat16)
    s3, b3 = bn_fold(keys[5], cout)

    params = dict(w1=w1, s1=s1, b1=b1, w2=w2, s2=s2, b2=b2,
                  w3=w3, s3=s3, b3=b3)
    if stride != 1 or in_planes != cout:
        params['wsc'] = jnp.transpose(
            conv_w(keys[6], (cout, in_planes, 1, 1))[:, :, 0, 0], (1, 0)
        ).astype(jnp.bfloat16)
        params['ssc'], params['bsc'] = bn_fold(keys[7], cout)
    return params


# ---------------------------------------------------------------------------
# Pure-JAX reference (lax conv) mirroring the kernel's bf16 rounding points.
# ---------------------------------------------------------------------------
def reference_forward(x_nchw, params, *, stride=1):
    f32 = jnp.float32
    x = jnp.transpose(x_nchw, (0, 2, 3, 1)).astype(jnp.bfloat16).astype(f32)
    dn = ('NHWC', 'HWIO', 'NHWC')

    def conv1x1(y, w, s):
        return lax.conv_general_dilated(y, w.astype(f32)[None, None, :, :],
                                        (s, s), 'VALID', dimension_numbers=dn,
                                        precision=lax.Precision.HIGHEST)

    def conv3x3(y, w_packed, s):
        P = w_packed.shape[-1]
        w = w_packed.astype(f32).reshape(3, 3, P, P)          # HWIO
        return lax.conv_general_dilated(y, w, (s, s), ((1, 1), (1, 1)),
                                        dimension_numbers=dn,
                                        precision=lax.Precision.HIGHEST)

    h = jax.nn.relu(conv1x1(x, params['w1'], 1) * params['s1'] + params['b1'])
    h = h.astype(jnp.bfloat16).astype(f32)
    h = jax.nn.relu(conv3x3(h, params['w2'], stride) * params['s2'] + params['b2'])
    h = h.astype(jnp.bfloat16).astype(f32)
    h = conv1x1(h, params['w3'], 1) * params['s3'] + params['b3']
    if 'wsc' in params:
        sc = conv1x1(x, params['wsc'], stride) * params['ssc'] + params['bsc']
    else:
        sc = x
    out = jax.nn.relu(h + sc)
    return jnp.transpose(out, (0, 3, 1, 2))


if __name__ == "__main__":
    N, H, W = 2, 16, 16
    # (in_planes, planes, stride, row_chunk) -- exercise projection shortcut,
    # identity shortcut, and stride-2 downsampling with multiple row chunks.
    configs = [(4, 4, 1, 4),
               (16, 4, 1, 8),
               (4, 4, 2, 4)]

    key = jax.random.PRNGKey(0)
    for in_planes, planes, stride, row_chunk in configs:
        key, kx, kp = jax.random.split(key, 3)
        x = jax.random.normal(kx, (N, in_planes, H, W), jnp.float32)   # NCHW
        params = init_params(kp, in_planes, planes, stride)

        out = jax.block_until_ready(
            bottleneck_forward(x, params, stride=stride, row_chunk=row_chunk))
        ref = reference_forward(x, params, stride=stride)

        Ho = (H - 1) // stride + 1
        assert out.shape == (N, EXPANSION * planes, Ho, Ho)
        np.testing.assert_allclose(np.asarray(out), np.asarray(ref),
                                   rtol=1e-2, atol=1e-2)
    print("KERNEL_OK")
</pallas_src>

<mosaic_0001>
module attributes {stable_mosaic.version = 11 : i64} {
  func.func @_bottleneck_kernel(%arg0: i32, %arg1: i32, %arg2: memref<1x18x24x4xbf16, #tpu.memory_space<vmem>>, %arg3: memref<4x4xbf16, #tpu.memory_space<vmem>>, %arg4: memref<1x4xf32, #tpu.memory_space<vmem>>, %arg5: memref<1x4xf32, #tpu.memory_space<vmem>>, %arg6: memref<3x12x4xbf16, #tpu.memory_space<vmem>>, %arg7: memref<1x4xf32, #tpu.memory_space<vmem>>, %arg8: memref<1x4xf32, #tpu.memory_space<vmem>>, %arg9: memref<4x16xbf16, #tpu.memory_space<vmem>>, %arg10: memref<1x16xf32, #tpu.memory_space<vmem>>, %arg11: memref<1x16xf32, #tpu.memory_space<vmem>>, %arg12: memref<4x16xbf16, #tpu.memory_space<vmem>>, %arg13: memref<1x16xf32, #tpu.memory_space<vmem>>, %arg14: memref<1x16xf32, #tpu.memory_space<vmem>>, %arg15: memref<1x4x16x16xf32, #tpu.memory_space<vmem>>) attributes {dimension_semantics = [#tpu.dimension_semantics<parallel>, #tpu.dimension_semantics<parallel>], iteration_bounds = array<i64: 2, 4>, scalar_prefetch = 0 : i64, scratch_operands = 0 : i64, tpu.core_type = #tpu.core_type<tc>, window_params = [{transform_indices = @transform_0, window_bounds = array<i64: 1, 18, 24, 4>}, {pipeline_mode = #tpu.pipeline_mode<synchronous>, transform_indices = @transform_1, window_bounds = array<i64: 4, 4>}, {pipeline_mode = #tpu.pipeline_mode<synchronous>, transform_indices = @transform_2, window_bounds = array<i64: 1, 4>}, {pipeline_mode = #tpu.pipeline_mode<synchronous>, transform_indices = @transform_3, window_bounds = array<i64: 1, 4>}, {pipeline_mode = #tpu.pipeline_mode<synchronous>, transform_indices = @transform_4, window_bounds = array<i64: 3, 12, 4>}, {pipeline_mode = #tpu.pipeline_mode<synchronous>, transform_indices = @transform_5, window_bounds = array<i64: 1, 4>}, {pipeline_mode = #tpu.pipeline_mode<synchronous>, transform_indices = @transform_6, window_bounds = array<i64: 1, 4>}, {pipeline_mode = #tpu.pipeline_mode<synchronous>, transform_indices = @transform_7, window_bounds = array<i64: 4, 16>}, {pipeline_mode = #tpu.pipeline_mode<synchronous>, transform_indices = @transform_8, window_bounds = array<i64: 1, 16>}, {pipeline_mode = #tpu.pipeline_mode<synchronous>, transform_indices = @transform_9, window_bounds = array<i64: 1, 16>}, {pipeline_mode = #tpu.pipeline_mode<synchronous>, transform_indices = @transform_10, window_bounds = array<i64: 4, 16>}, {pipeline_mode = #tpu.pipeline_mode<synchronous>, transform_indices = @transform_11, window_bounds = array<i64: 1, 16>}, {pipeline_mode = #tpu.pipeline_mode<synchronous>, transform_indices = @transform_12, window_bounds = array<i64: 1, 16>}, {transform_indices = @transform_13, window_bounds = array<i64: 1, 4, 16, 16>}]} {
    %c4_i32 = arith.constant 4 : i32
    %0 = arith.muli %arg1, %c4_i32 : i32
    %1 = tpu.assume_multiple %0, 4 : i32
    %c0 = arith.constant 0 : index
    %2 = arith.index_cast %1 : i32 to index
    %c0_0 = arith.constant 0 : index
    %c0_1 = arith.constant 0 : index
    %3 = vector.load %arg2[%c0, %2, %c0_0, %c0_1] : memref<1x18x24x4xbf16, #tpu.memory_space<vmem>>, vector<1x6x24x4xbf16>
    %4 = vector.shape_cast %3 : vector<1x6x24x4xbf16> to vector<6x24x4xbf16>
    %5 = vector.shape_cast %4 : vector<6x24x4xbf16> to vector<144x4xbf16>
    %c0_2 = arith.constant 0 : index
    %c0_3 = arith.constant 0 : index
    %6 = vector.load %arg3[%c0_2, %c0_3] : memref<4x4xbf16, #tpu.memory_space<vmem>>, vector<4x4xbf16>
    %cst = arith.constant dense<0.000000e+00> : vector<144x4xf32>
    %7 = tpu.matmul %5, %6, %cst {dimension_numbers = #tpu.dot_dimension_numbers<[1], [0], [0], [1], [0, 0, 1, 1], [], []>} : vector<144x4xbf16>, vector<4x4xbf16>, vector<144x4xf32> -> vector<144x4xf32>
    %c0_4 = arith.constant 0 : index
    %c0_5 = arith.constant 0 : index
    %8 = vector.load %arg4[%c0_4, %c0_5] : memref<1x4xf32, #tpu.memory_space<vmem>>, vector<1x4xf32>
    %9 = vector.broadcast %8 : vector<1x4xf32> to vector<144x4xf32>
    %10 = arith.mulf %7, %9 : vector<144x4xf32>
    %c0_6 = arith.constant 0 : index
    %c0_7 = arith.constant 0 : index
    %11 = vector.load %arg5[%c0_6, %c0_7] : memref<1x4xf32, #tpu.memory_space<vmem>>, vector<1x4xf32>
    %12 = vector.broadcast %11 : vector<1x4xf32> to vector<144x4xf32>
    %13 = arith.addf %10, %12 : vector<144x4xf32>
    %cst_8 = arith.constant 0.000000e+00 : f32
    %14 = vector.broadcast %cst_8 : f32 to vector<144x4xf32>
    %15 = arith.maximumf %13, %14 : vector<144x4xf32>
    %16 = vector.shape_cast %15 : vector<144x4xf32> to vector<6x24x4xf32>
    %17 = tpu.iota {dimensions = array<i32: 0>} : vector<6x24x4xi32>
    %18 = vector.broadcast %1 : i32 to vector<6x24x4xi32>
    %19 = arith.addi %17, %18 : vector<6x24x4xi32>
    %20 = tpu.iota {dimensions = array<i32: 1>} : vector<6x24x4xi32>
    %c1_i32 = arith.constant 1 : i32
    %21 = vector.broadcast %c1_i32 : i32 to vector<6x24x4xi32>
    %22 = arith.cmpi sge, %19, %21 : vector<6x24x4xi32>
    %c16_i32 = arith.constant 16 : i32
    %23 = vector.broadcast %c16_i32 : i32 to vector<6x24x4xi32>
    %24 = arith.cmpi sle, %19, %23 : vector<6x24x4xi32>
    %25 = arith.andi %22, %24 : vector<6x24x4xi1>
    %c1_i32_9 = arith.constant 1 : i32
    %26 = vector.broadcast %c1_i32_9 : i32 to vector<6x24x4xi32>
    %27 = arith.cmpi sge, %20, %26 : vector<6x24x4xi32>
    %28 = arith.andi %25, %27 : vector<6x24x4xi1>
    %c16_i32_10 = arith.constant 16 : i32
    %29 = vector.broadcast %c16_i32_10 : i32 to vector<6x24x4xi32>
    %30 = arith.cmpi sle, %20, %29 : vector<6x24x4xi32>
    %31 = arith.andi %28, %30 : vector<6x24x4xi1>
    %cst_11 = arith.constant 0.000000e+00 : f32
    %32 = vector.broadcast %cst_11 : f32 to vector<6x24x4xf32>
    %33 = arith.select %31, %16, %32 : vector<6x24x4xi1>, vector<6x24x4xf32>
    %34 = arith.truncf %33 : vector<6x24x4xf32> to vector<6x24x4xbf16>
    %cst_12 = arith.constant 0.000000e+00 : f32
    %35 = vector.broadcast %cst_12 : f32 to vector<64x4xf32>
    %c0_13 = arith.constant 0 : index
    %c0_14 = arith.constant 0 : index
    %c0_15 = arith.constant 0 : index
    %36 = vector.load %arg6[%c0_13, %c0_14, %c0_15] : memref<3x12x4xbf16, #tpu.memory_space<vmem>>, vector<1x12x4xbf16>
    %37 = vector.shape_cast %36 : vector<1x12x4xbf16> to vector<12x4xbf16>
    %38 = vector.extract_strided_slice %34 {offsets = [0, 0, 0], sizes = [4, 16, 4], strides = [1, 1, 1]} : vector<6x24x4xbf16> to vector<4x16x4xbf16>
    %39 = vector.shape_cast %38 : vector<4x16x4xbf16> to vector<64x4xbf16>
    %40 = vector.extract_strided_slice %34 {offsets = [0, 1, 0], sizes = [4, 16, 4], strides = [1, 1, 1]} : vector<6x24x4xbf16> to vector<4x16x4xbf16>
    %41 = vector.shape_cast %40 : vector<4x16x4xbf16> to vector<64x4xbf16>
    %42 = vector.extract_strided_slice %34 {offsets = [0, 2, 0], sizes = [4, 16, 4], strides = [1, 1, 1]} : vector<6x24x4xbf16> to vector<4x16x4xbf16>
    %43 = vector.shape_cast %42 : vector<4x16x4xbf16> to vector<64x4xbf16>
    %44 = vector.extract_strided_slice %37 {offsets = [0, 0], sizes = [4, 4], strides = [1, 1]} : vector<12x4xbf16> to vector<4x4xbf16>
    %cst_16 = arith.constant dense<0.000000e+00> : vector<64x4xf32>
    %45 = tpu.matmul %39, %44, %cst_16 {dimension_numbers = #tpu.dot_dimension_numbers<[1], [0], [0], [1], [0, 0, 1, 1], [], []>} : vector<64x4xbf16>, vector<4x4xbf16>, vector<64x4xf32> -> vector<64x4xf32>
    %46 = arith.addf %35, %45 : vector<64x4xf32>
    %47 = vector.extract_strided_slice %37 {offsets = [4, 0], sizes = [4, 4], strides = [1, 1]} : vector<12x4xbf16> to vector<4x4xbf16>
    %cst_17 = arith.constant dense<0.000000e+00> : vector<64x4xf32>
    %48 = tpu.matmul %41, %47, %cst_17 {dimension_numbers = #tpu.dot_dimension_numbers<[1], [0], [0], [1], [0, 0, 1, 1], [], []>} : vector<64x4xbf16>, vector<4x4xbf16>, vector<64x4xf32> -> vector<64x4xf32>
    %49 = arith.addf %46, %48 : vector<64x4xf32>
    %50 = vector.extract_strided_slice %37 {offsets = [8, 0], sizes = [4, 4], strides = [1, 1]} : vector<12x4xbf16> to vector<4x4xbf16>
    %cst_18 = arith.constant dense<0.000000e+00> : vector<64x4xf32>
    %51 = tpu.matmul %43, %50, %cst_18 {dimension_numbers = #tpu.dot_dimension_numbers<[1], [0], [0], [1], [0, 0, 1, 1], [], []>} : vector<64x4xbf16>, vector<4x4xbf16>, vector<64x4xf32> -> vector<64x4xf32>
    %52 = arith.addf %49, %51 : vector<64x4xf32>
    %c1 = arith.constant 1 : index
    %c0_19 = arith.constant 0 : index
    %c0_20 = arith.constant 0 : index
    %53 = vector.load %arg6[%c1, %c0_19, %c0_20] : memref<3x12x4xbf16, #tpu.memory_space<vmem>>, vector<1x12x4xbf16>
    %54 = vector.shape_cast %53 : vector<1x12x4xbf16> to vector<12x4xbf16>
    %55 = vector.extract_strided_slice %34 {offsets = [1, 0, 0], sizes = [4, 16, 4], strides = [1, 1, 1]} : vector<6x24x4xbf16> to vector<4x16x4xbf16>
    %56 = vector.shape_cast %55 : vector<4x16x4xbf16> to vector<64x4xbf16>
    %57 = vector.extract_strided_slice %34 {offsets = [1, 1, 0], sizes = [4, 16, 4], strides = [1, 1, 1]} : vector<6x24x4xbf16> to vector<4x16x4xbf16>
    %58 = vector.shape_cast %57 : vector<4x16x4xbf16> to vector<64x4xbf16>
    %59 = vector.extract_strided_slice %34 {offsets = [1, 2, 0], sizes = [4, 16, 4], strides = [1, 1, 1]} : vector<6x24x4xbf16> to vector<4x16x4xbf16>
    %60 = vector.shape_cast %59 : vector<4x16x4xbf16> to vector<64x4xbf16>
    %61 = vector.extract_strided_slice %54 {offsets = [0, 0], sizes = [4, 4], strides = [1, 1]} : vector<12x4xbf16> to vector<4x4xbf16>
    %cst_21 = arith.constant dense<0.000000e+00> : vector<64x4xf32>
    %62 = tpu.matmul %56, %61, %cst_21 {dimension_numbers = #tpu.dot_dimension_numbers<[1], [0], [0], [1], [0, 0, 1, 1], [], []>} : vector<64x4xbf16>, vector<4x4xbf16>, vector<64x4xf32> -> vector<64x4xf32>
    %63 = arith.addf %52, %62 : vector<64x4xf32>
    %64 = vector.extract_strided_slice %54 {offsets = [4, 0], sizes = [4, 4], strides = [1, 1]} : vector<12x4xbf16> to vector<4x4xbf16>
    %cst_22 = arith.constant dense<0.000000e+00> : vector<64x4xf32>
    %65 = tpu.matmul %58, %64, %cst_22 {dimension_numbers = #tpu.dot_dimension_numbers<[1], [0], [0], [1], [0, 0, 1, 1], [], []>} : vector<64x4xbf16>, vector<4x4xbf16>, vector<64x4xf32> -> vector<64x4xf32>
    %66 = arith.addf %63, %65 : vector<64x4xf32>
    %67 = vector.extract_strided_slice %54 {offsets = [8, 0], sizes = [4, 4], strides = [1, 1]} : vector<12x4xbf16> to vector<4x4xbf16>
    %cst_23 = arith.constant dense<0.000000e+00> : vector<64x4xf32>
    %68 = tpu.matmul %60, %67, %cst_23 {dimension_numbers = #tpu.dot_dimension_numbers<[1], [0], [0], [1], [0, 0, 1, 1], [], []>} : vector<64x4xbf16>, vector<4x4xbf16>, vector<64x4xf32> -> vector<64x4xf32>
    %69 = arith.addf %66, %68 : vector<64x4xf32>
    %c2 = arith.constant 2 : index
    %c0_24 = arith.constant 0 : index
    %c0_25 = arith.constant 0 : index
    %70 = vector.load %arg6[%c2, %c0_24, %c0_25] : memref<3x12x4xbf16, #tpu.memory_space<vmem>>, vector<1x12x4xbf16>
    %71 = vector.shape_cast %70 : vector<1x12x4xbf16> to vector<12x4xbf16>
    %72 = vector.extract_strided_slice %34 {offsets = [2, 0, 0], sizes = [4, 16, 4], strides = [1, 1, 1]} : vector<6x24x4xbf16> to vector<4x16x4xbf16>
    %73 = vector.shape_cast %72 : vector<4x16x4xbf16> to vector<64x4xbf16>
    %74 = vector.extract_strided_slice %34 {offsets = [2, 1, 0], sizes = [4, 16, 4], strides = [1, 1, 1]} : vector<6x24x4xbf16> to vector<4x16x4xbf16>
    %75 = vector.shape_cast %74 : vector<4x16x4xbf16> to vector<64x4xbf16>
    %76 = vector.extract_strided_slice %34 {offsets = [2, 2, 0], sizes = [4, 16, 4], strides = [1, 1, 1]} : vector<6x24x4xbf16> to vector<4x16x4xbf16>
    %77 = vector.shape_cast %76 : vector<4x16x4xbf16> to vector<64x4xbf16>
    %78 = vector.extract_strided_slice %71 {offsets = [0, 0], sizes = [4, 4], strides = [1, 1]} : vector<12x4xbf16> to vector<4x4xbf16>
    %cst_26 = arith.constant dense<0.000000e+00> : vector<64x4xf32>
    %79 = tpu.matmul %73, %78, %cst_26 {dimension_numbers = #tpu.dot_dimension_numbers<[1], [0], [0], [1], [0, 0, 1, 1], [], []>} : vector<64x4xbf16>, vector<4x4xbf16>, vector<64x4xf32> -> vector<64x4xf32>
    %80 = arith.addf %69, %79 : vector<64x4xf32>
    %81 = vector.extract_strided_slice %71 {offsets = [4, 0], sizes = [4, 4], strides = [1, 1]} : vector<12x4xbf16> to vector<4x4xbf16>
    %cst_27 = arith.constant dense<0.000000e+00> : vector<64x4xf32>
    %82 = tpu.matmul %75, %81, %cst_27 {dimension_numbers = #tpu.dot_dimension_numbers<[1], [0], [0], [1], [0, 0, 1, 1], [], []>} : vector<64x4xbf16>, vector<4x4xbf16>, vector<64x4xf32> -> vector<64x4xf32>
    %83 = arith.addf %80, %82 : vector<64x4xf32>
    %84 = vector.extract_strided_slice %71 {offsets = [8, 0], sizes = [4, 4], strides = [1, 1]} : vector<12x4xbf16> to vector<4x4xbf16>
    %cst_28 = arith.constant dense<0.000000e+00> : vector<64x4xf32>
    %85 = tpu.matmul %77, %84, %cst_28 {dimension_numbers = #tpu.dot_dimension_numbers<[1], [0], [0], [1], [0, 0, 1, 1], [], []>} : vector<64x4xbf16>, vector<4x4xbf16>, vector<64x4xf32> -> vector<64x4xf32>
    %86 = arith.addf %83, %85 : vector<64x4xf32>
    %c0_29 = arith.constant 0 : index
    %c0_30 = arith.constant 0 : index
    %87 = vector.load %arg7[%c0_29, %c0_30] : memref<1x4xf32, #tpu.memory_space<vmem>>, vector<1x4xf32>
    %88 = vector.broadcast %87 : vector<1x4xf32> to vector<64x4xf32>
    %89 = arith.mulf %86, %88 : vector<64x4xf32>
    %c0_31 = arith.constant 0 : index
    %c0_32 = arith.constant 0 : index
    %90 = vector.load %arg8[%c0_31, %c0_32] : memref<1x4xf32, #tpu.memory_space<vmem>>, vector<1x4xf32>
    %91 = vector.broadcast %90 : vector<1x4xf32> to vector<64x4xf32>
    %92 = arith.addf %89, %91 : vector<64x4xf32>
    %cst_33 = arith.constant 0.000000e+00 : f32
    %93 = vector.broadcast %cst_33 : f32 to vector<64x4xf32>
    %94 = arith.maximumf %92, %93 : vector<64x4xf32>
    %95 = arith.truncf %94 : vector<64x4xf32> to vector<64x4xbf16>
    %c0_34 = arith.constant 0 : index
    %c0_35 = arith.constant 0 : index
    %96 = vector.load %arg9[%c0_34, %c0_35] : memref<4x16xbf16, #tpu.memory_space<vmem>>, vector<4x16xbf16>
    %cst_36 = arith.constant dense<0.000000e+00> : vector<64x16xf32>
    %97 = tpu.matmul %95, %96, %cst_36 {dimension_numbers = #tpu.dot_dimension_numbers<[1], [0], [0], [1], [0, 0, 1, 1], [], []>} : vector<64x4xbf16>, vector<4x16xbf16>, vector<64x16xf32> -> vector<64x16xf32>
    %c0_37 = arith.constant 0 : index
    %c0_38 = arith.constant 0 : index
    %98 = vector.load %arg10[%c0_37, %c0_38] : memref<1x16xf32, #tpu.memory_space<vmem>>, vector<1x16xf32>
    %99 = vector.broadcast %98 : vector<1x16xf32> to vector<64x16xf32>
    %100 = arith.mulf %97, %99 : vector<64x16xf32>
    %c0_39 = arith.constant 0 : index
    %c0_40 = arith.constant 0 : index
    %101 = vector.load %arg11[%c0_39, %c0_40] : memref<1x16xf32, #tpu.memory_space<vmem>>, vector<1x16xf32>
    %102 = vector.broadcast %101 : vector<1x16xf32> to vector<64x16xf32>
    %103 = arith.addf %100, %102 : vector<64x16xf32>
    %c1_i32_41 = arith.constant 1 : i32
    %104 = arith.addi %1, %c1_i32_41 : i32
    %c0_42 = arith.constant 0 : index
    %105 = arith.index_cast %104 : i32 to index
    %c0_43 = arith.constant 0 : index
    %c0_44 = arith.constant 0 : index
    %106 = vector.load %arg2[%c0_42, %105, %c0_43, %c0_44] : memref<1x18x24x4xbf16, #tpu.memory_space<vmem>>, vector<1x4x24x4xbf16>
    %107 = vector.shape_cast %106 : vector<1x4x24x4xbf16> to vector<4x24x4xbf16>
    %108 = vector.extract_strided_slice %107 {offsets = [0, 1, 0], sizes = [4, 16, 4], strides = [1, 1, 1]} : vector<4x24x4xbf16> to vector<4x16x4xbf16>
    %109 = vector.shape_cast %108 : vector<4x16x4xbf16> to vector<64x4xbf16>
    %c0_45 = arith.constant 0 : index
    %c0_46 = arith.constant 0 : index
    %110 = vector.load %arg12[%c0_45, %c0_46] : memref<4x16xbf16, #tpu.memory_space<vmem>>, vector<4x16xbf16>
    %cst_47 = arith.constant dense<0.000000e+00> : vector<64x16xf32>
    %111 = tpu.matmul %109, %110, %cst_47 {dimension_numbers = #tpu.dot_dimension_numbers<[1], [0], [0], [1], [0, 0, 1, 1], [], []>} : vector<64x4xbf16>, vector<4x16xbf16>, vector<64x16xf32> -> vector<64x16xf32>
    %c0_48 = arith.constant 0 : index
    %c0_49 = arith.constant 0 : index
    %112 = vector.load %arg13[%c0_48, %c0_49] : memref<1x16xf32, #tpu.memory_space<vmem>>, vector<1x16xf32>
    %113 = vector.broadcast %112 : vector<1x16xf32> to vector<64x16xf32>
    %114 = arith.mulf %111, %113 : vector<64x16xf32>
    %c0_50 = arith.constant 0 : index
    %c0_51 = arith.constant 0 : index
    %115 = vector.load %arg14[%c0_50, %c0_51] : memref<1x16xf32, #tpu.memory_space<vmem>>, vector<1x16xf32>
    %116 = vector.broadcast %115 : vector<1x16xf32> to vector<64x16xf32>
    %117 = arith.addf %114, %116 : vector<64x16xf32>
    %118 = arith.addf %103, %117 : vector<64x16xf32>
    %cst_52 = arith.constant 0.000000e+00 : f32
    %119 = vector.broadcast %cst_52 : f32 to vector<64x16xf32>
    %120 = arith.maximumf %118, %119 : vector<64x16xf32>
    %121 = vector.shape_cast %120 : vector<64x16xf32> to vector<1x4x16x16xf32>
    %c0_53 = arith.constant 0 : index
    %c0_54 = arith.constant 0 : index
    %c0_55 = arith.constant 0 : index
    %c0_56 = arith.constant 0 : index
    %122 = vector.load %arg15[%c0_53, %c0_54, %c0_55, %c0_56] : memref<1x4x16x16xf32, #tpu.memory_space<vmem>>, vector<1x4x16x16xf32>
    tpu.vector_store %arg15[%c0_53, %c0_54, %c0_55, %c0_56], %121 {strides = array<i32>} : memref<1x4x16x16xf32, #tpu.memory_space<vmem>>, vector<1x4x16x16xf32>,
    return
  }
  func.func @transform_0(%arg0: i32, %arg1: i32) -> (i32, i32, i32, i32) {
    %c0_i32 = arith.constant 0 : i32
    %c0_i32_0 = arith.constant 0 : i32
    %c0_i32_1 = arith.constant 0 : i32
    %c0_i32_2 = arith.constant 0 : i32
    return %arg0, %c0_i32, %c0_i32_0, %c0_i32_1 : i32, i32, i32, i32
  }
  func.func @transform_1(%arg0: i32, %arg1: i32) -> (i32, i32) {
    %c0_i32 = arith.constant 0 : i32
    %c0_i32_0 = arith.constant 0 : i32
    %c0_i32_1 = arith.constant 0 : i32
    return %c0_i32, %c0_i32_0 : i32, i32
  }
  func.func @transform_2(%arg0: i32, %arg1: i32) -> (i32, i32) {
    %c0_i32 = arith.constant 0 : i32
    %c0_i32_0 = arith.constant 0 : i32
    %c0_i32_1 = arith.constant 0 : i32
    return %c0_i32, %c0_i32_0 : i32, i32
  }
  func.func @transform_3(%arg0: i32, %arg1: i32) -> (i32, i32) {
    %c0_i32 = arith.constant 0 : i32
    %c0_i32_0 = arith.constant 0 : i32
    %c0_i32_1 = arith.constant 0 : i32
    return %c0_i32, %c0_i32_0 : i32, i32
  }
  func.func @transform_4(%arg0: i32, %arg1: i32) -> (i32, i32, i32) {
    %c0_i32 = arith.constant 0 : i32
    %c0_i32_0 = arith.constant 0 : i32
    %c0_i32_1 = arith.constant 0 : i32
    %c0_i32_2 = arith.constant 0 : i32
    return %c0_i32, %c0_i32_0, %c0_i32_1 : i32, i32, i32
  }
  func.func @transform_5(%arg0: i32, %arg1: i32) -> (i32, i32) {
    %c0_i32 = arith.constant 0 : i32
    %c0_i32_0 = arith.constant 0 : i32
    %c0_i32_1 = arith.constant 0 : i32
    return %c0_i32, %c0_i32_0 : i32, i32
  }
  func.func @transform_6(%arg0: i32, %arg1: i32) -> (i32, i32) {
    %c0_i32 = arith.constant 0 : i32
    %c0_i32_0 = arith.constant 0 : i32
    %c0_i32_1 = arith.constant 0 : i32
    return %c0_i32, %c0_i32_0 : i32, i32
  }
  func.func @transform_7(%arg0: i32, %arg1: i32) -> (i32, i32) {
    %c0_i32 = arith.constant 0 : i32
    %c0_i32_0 = arith.constant 0 : i32
    %c0_i32_1 = arith.constant 0 : i32
    return %c0_i32, %c0_i32_0 : i32, i32
  }
  func.func @transform_8(%arg0: i32, %arg1: i32) -> (i32, i32) {
    %c0_i32 = arith.constant 0 : i32
    %c0_i32_0 = arith.constant 0 : i32
    %c0_i32_1 = arith.constant 0 : i32
    return %c0_i32, %c0_i32_0 : i32, i32
  }
  func.func @transform_9(%arg0: i32, %arg1: i32) -> (i32, i32) {
    %c0_i32 = arith.constant 0 : i32
    %c0_i32_0 = arith.constant 0 : i32
    %c0_i32_1 = arith.constant 0 : i32
    return %c0_i32, %c0_i32_0 : i32, i32
  }
  func.func @transform_10(%arg0: i32, %arg1: i32) -> (i32, i32) {
    %c0_i32 = arith.constant 0 : i32
    %c0_i32_0 = arith.constant 0 : i32
    %c0_i32_1 = arith.constant 0 : i32
    return %c0_i32, %c0_i32_0 : i32, i32
  }
  func.func @transform_11(%arg0: i32, %arg1: i32) -> (i32, i32) {
    %c0_i32 = arith.constant 0 : i32
    %c0_i32_0 = arith.constant 0 : i32
    %c0_i32_1 = arith.constant 0 : i32
    return %c0_i32, %c0_i32_0 : i32, i32
  }
  func.func @transform_12(%arg0: i32, %arg1: i32) -> (i32, i32) {
    %c0_i32 = arith.constant 0 : i32
    %c0_i32_0 = arith.constant 0 : i32
    %c0_i32_1 = arith.constant 0 : i32
    return %c0_i32, %c0_i32_0 : i32, i32
  }
  func.func @transform_13(%arg0: i32, %arg1: i32) -> (i32, i32, i32, i32) {
    %c0_i32 = arith.constant 0 : i32
    %c0_i32_0 = arith.constant 0 : i32
    %c0_i32_1 = arith.constant 0 : i32
    return %arg0, %arg1, %c0_i32, %c0_i32_0 : i32, i32, i32, i32
  }
}

</mosaic_0001>

<bundles_post_ra>
// kernel: tpu_custom_call.1
= control target key start
LH: loop header
LB: loop body
LE: loop exit
PB: predicated region body
PF: predicated region fallthrough
CT: control target
= control target key end

     0   :  { %s3405_s0 = inlined_call_operand.vmem [shape: bf16[2,18,24,4], index: 0, kind: input, shape index: {}]   ;;  %s3406_s1 = inlined_call_operand.vmem [shape: bf16[4,4], index: 1, kind: input, shape index: {}]   ;;  %s3407_s2 = inlined_call_operand.vmem [shape: f32[1,4], index: 2, kind: input, shape index: {}]   ;;  %s3408_s3 = inlined_call_operand.vmem [shape: f32[1,4], index: 3, kind: input, shape index: {}]   ;;  %s3409_s4 = inlined_call_operand.vmem [shape: bf16[3,12,4], index: 4, kind: input, shape index: {}]   ;;  %s3410_s5 = inlined_call_operand.vmem [shape: f32[1,4], index: 5, kind: input, shape index: {}]   ;;  %s3411_s6 = inlined_call_operand.vmem [shape: f32[1,4], index: 6, kind: input, shape index: {}]   ;;  %s3412_s7 = inlined_call_operand.vmem [shape: bf16[4,16], index: 7, kind: input, shape index: {}]   ;;  %s3413_s8 = inlined_call_operand.vmem [shape: f32[1,16], index: 8, kind: input, shape index: {}]   ;;  %s3414_s9 = inlined_call_operand.vmem [shape: f32[1,16], index: 9, kind: input, shape index: {}]   ;;  %s3415_s10 = inlined_call_operand.vmem [shape: bf16[4,16], index: 10, kind: input, shape index: {}]   ;;  %s3416_s11 = inlined_call_operand.vmem [shape: f32[1,16], index: 11, kind: input, shape index: {}]   ;;  %s3417_s12 = inlined_call_operand.vmem [shape: f32[1,16], index: 12, kind: input, shape index: {}]   ;;  %s3418_s13 = inlined_call_operand.hbm [shape: f32[2,16,16,16], index: 13, kind: output, shape index: {}]  }
   0x1   :  { %3422 = sst [smem:[#allocation8_spill]] %s3405_s0 }
   0x2   :  { %3423 = sst [smem:[#allocation9_spill]] %s3406_s1 }
   0x3   :  { %3424 = sst [smem:[#allocation10_spill]] %s3407_s2 }
   0x4   :  { %18 = vsyncpa [#allocation3], 0 }
   0x5   :  { %20 = vsyncpa [#allocation3 + $0x1], 0  ;;  %s2778_s25 = smov 0   ;;  %s2780_s26 = smov 0  }
   0x6   :  { %s2782_s27 = smov 0   ;;  %s2784_s28 = smov 0  }
   0x7   :  { %s2786_s29 = smov 0   ;;  %s2788_s30 = smov 0  }
   0x8   :  { %s2790_s14 = smov 0   ;;  %s2792_s15 = smov 0  }
   0x9 LB: > { %3425 = sst [smem:[#allocation5_spill]] %s2673_s25  ;;  %s2183_s16 = sadd.s32 4294967295, %s2701_s15   ;;  %s2701_s15 = sphi %s2792_s15, %s26_s15   ;;  %s2697_s14 = sphi %s2790_s14, %s3454_s14   ;;  %s2693_s30 = sphi %s2788_s30, %s3449_s30   ;;  %s2689_s29 = sphi %s2786_s29, %s3453_s29   ;;  %s2685_s28 = sphi %s2784_s28, %s3448_s28   ;;  %s2681_s27 = sphi %s2782_s27, %s3452_s27   ;;  %s2677_s26 = sphi %s2780_s26, %s3451_s26   ;;  %s2673_s25 = sphi %s2778_s25, %s3450_s25  }
   0xa   : > { %3426 = sst [smem:[#allocation6_spill]] %s2693_s30  ;;  %s2184_s17 = sadd.s32 4294967294, %s2701_s15  }
   0xb   : > { %s35_s18 = sadd.s32 1, %s2693_s30  ;;  %s38_s19 = sadd.s32 1, %s2697_s14 }
   0xc   : > { %p36_p0 = scmp.ge.s32.totalorder %s35_s18, 4  ;;  %p335_p1 = scmp.ne.s32.totalorder %s2681_s27, %s2677_s26 }
   0xd   : > { %p336_p2 = scmp.eq.s32.totalorder %s2183_s16, 7  ;;  %p341_p5 = scmp.ne.s32.totalorder %s2677_s26, %s2673_s25 }
   0xe   : > { %s3456_s18 = smov (%p36_p0, %s35_s18), 0  ;;  %s3458_s19 = smov (!%p36_p0, %s38_s19), %s2697_s14 }
   0xf   : > { %3427 = sst [smem:[#allocation7_spill]] %s3456_s18  ;;  %s321_s20 = ssub.s32 %s2693_s30, %s3456_s18 }
  0x10   : > { %p2829_p3 = por %p336_p2, %p335_p1  ;;  %p40_p4 = scmp.ge.s32.totalorder %s3458_s19, 2 }
  0x11   : > { %p342_p6 = scmp.eq.s32.totalorder %s2184_s17, 7  ;;  %p2187_p7 = scmp.ge.s32.totalorder %s2701_s15, 1 }
  0x12   : > { %s3460_s19 = smov (%p40_p4, %s3458_s19), 0  ;;  %p404_p9 = scmp.lt.s32.totalorder %s2701_s15, 9 }
  0x13   : > { %p2838_p8 = por %p342_p6, %p341_p5  ;;  %s320_s23 = ssub.s32 %s2697_s14, %s3460_s19 }
  0x14   : > { %s325_s24 = sadd.s32 1, %s2681_s27  ;;  %s322_s16 = sor.u32 %s321_s20, %s320_s23 }
  0x15   : > { %p405_p10 = pnand %p2187_p7, %p404_p9  ;;  %p323_p11 = scmp.eq.s32.totalorder %s322_s16, 0 }
  0x16   : > { %s3430_s1 = sld [smem:[#allocation9_spill]] (!%p405_p10)  ;;  %p448_p12 = scmp.lt.s32.totalorder (!%p405_p10), %s2689_s29, 1 }
  0x17   : > { %s2847_s18 = scalar_select %p323_p11, %s2681_s27, %s325_s24  }
  0x18   : > { %408 = sbr.rel (%p405_p10) target bundleno = 814 (0x32e), region = 72  ;;  %s3431_s0 = sld [smem:[#allocation8_spill]] (!%p405_p10) }
  0x19   : > { %s2295_s20 = smul.u32 (!%p405_p10), 48, %s2685_s28  ;;  %s3432_s2 = sld [smem:[#allocation10_spill]] (!%p405_p10) }
  0x1d   : > { %v477_v0 = vld [vmem:[%s3430_s1] sm:$0x3]  ;;  %vm551_vm0 = vcmask 1041408   ;;  %v2703_v1 = vmov 0.0   ;;  %vm2704_vm1 = vmmov 0   ;;  %s449_s17 = scalar_select %p448_p12, %s2689_s29, 1  ;;  %v734_v21 = vlaneseq }
  0x1e   : > { %2362 = vmatprep.subr.bf16.mxu0 %v2703_v1  ;;  %v553_v2 = vsel %vm551_vm0, %v477_v0, 0  ;;  %2364 = vmatprep.mubr.msk.bf16.mxu0 %vm2704_vm1, %v2703_v1  ;;  %vm523_vm2 = vcmask 31744   ;;  %v2891_v12 = vld [vmem:[%s3409_s4] sm:$0xf]  ;;  %v2227_v16 = vld [vmem:[%s3409_s4 + $0xc] sm:$0x3] }
  0x1f   : > { %2363 = vmatpush3.bf16.msra.mxu0 %v553_v2  ;;  %s2521_s23 = smul.u32 216, %s449_s17  ;;  %v2213_v13 = vcombine.low %v2891_v12, %v2891_v12  ;;  %v1333_v17 = vsel %vm551_vm0, %v2227_v16, 0  ;;  %v2907_v18 = vld [vmem:[%s3409_s4 + $0x10] sm:$0xf]  ;;  %s2190_s17 = sshll.u32 %s2685_s28, 2  ;;  %v2929_v27 = vshrl.u32 %v734_v21, 7 }
  0x20   : > { %2515 = vmatprep.subr.msk.bf16.mxu0 %vm551_vm0, %v2227_v16  ;;  %v2247_v19 = vcombine.low %v2907_v18, %v2907_v18  ;;  %v2919_v22 = vld [vmem:[%s3432_s2] ss:$0 sm:$0xff]  ;;  %v2921_v23 = vstv %s2190_s17  ;;  %vm830_vm13 = vsmask.f32 7424  ;;  %s2296_s1 = sshll.u32 %s2685_s28, 3 }
  0x21   : > { %s452_s25 = scalar_lea.vmem %s3431_s0, %s2521_s23  ;;  %v903_v14 = vrot.slane %v2213_v13, 2  ;;  %v2926_v25 = vld [vmem:[%s3408_s3] ss:$0 sm:$0xff]  ;;  %vm738_vm3 = vcmp.ge.s32.totalorder %v2921_v23, 1  ;;  %vm744_vm4 = vcmp.le.s32.totalorder %v2921_v23, 16  ;;  %vm756_vm6 = vcmp.ge.s32.totalorder %v2929_v27, 1 }
  0x22   : > { %s2860_s30 = scalar_lea.vmem %s452_s25, %s2295_s20  ;;  %v2911_v20 = vrot.slane %v2247_v19, 2  ;;  %vm2934_vm5 = vmand %vm738_vm3, %vm744_vm4  ;;  %v2941_v33 = vadd.s32 16, %v2929_v27  ;;  %v729_v41 = vadd.s32 1, %v2921_v23  ;;  %s445_s25 = sand.u32 1, %s2677_s26  }
  0x23   : > { %v2597_v3 = vld [vmem:[%s2860_s30] sm:$0xff]   ;;  %v2598_v4 = vld [vmem:[%s2860_s30 + $0x8] sm:$0xff]   ;;  %v2599_v5 = vld [vmem:[%s2860_s30 + $0x10] sm:$0xff]   ;;  %2510 = vmatprep.subr.msk.bf16.mxu1 %vm551_vm0, %v903_v14  ;;  %v917_v15 = vsel %vm551_vm0, %v903_v14, 0  ;;  %s2188_s17 = sshll.u32 %s445_s25, 6  ;;  %s2291_s20 = sshll.u32 %s2689_s29, 5 }
  0x24   : > { %2365 = vmatmul.mubr.msk.bf16.vlgmr.msra.gmra.mxu0 %vm523_vm2, %v2597_v3  ;;  %v2600_v6 = vld [vmem:[%s2860_s30 + $0x18] sm:$0xff]   ;;  %v2601_v7 = vld [vmem:[%s2860_s30 + $0x20] sm:$0xff]   ;;  %v2602_v8 = vld [vmem:[%s2860_s30 + $0x28] sm:$0xff]   ;;  %2401 = vmatpush3.bf16.msra.mxu1 %v917_v15  ;;  %vm779_vm8 = vcmp.le.s32.totalorder %v2941_v33, 16  ;;  %vm739_vm10 = vcmp.ge.s32.totalorder %v729_v41, 1  ;;  %vm745_vm11 = vcmp.le.s32.totalorder %v729_v41, 16  ;;  %s2098_s28 = sadd.s32 %s2296_s1, %s2291_s20 }
  0x25   : > { %2368 = vmatprep.mubr.msk.bf16.mxu0 %vm2704_vm1, %v2703_v1  ;;  %v2603_v9 = vld [vmem:[%s2860_s30 + $0x30] sm:$0xff]   ;;  %v2604_v10 = vld [vmem:[%s2860_s30 + $0x38] sm:$0xff]   ;;  %v2605_v11 = vld [vmem:[%s2860_s30 + $0x40] sm:$0xff]   ;;  %2511 = vmatprep.subr.msk.bf16.mxu1 %vm551_vm0, %v2891_v12  ;;  %s3312_s0 = scalar_lea.vmem [#allocation2], %s2188_s17  ;;  %s2292_s29 = sshll.u32 %s2098_s28, 7 }
  0x26   : > { %2451 = vmatpush3.bf16.msra.mxu0 %v1333_v17  ;;  %vm759_vm7 = vmand %vm2934_vm5, %vm756_vm6  ;;  %s2101_s23 = sshll.u32 %s3312_s0, 4  ;;  %s3344_s16 = scalar_lea.hbm %s3418_s13, %s2292_s29  ;;  %s3346_s23 = int_to_ptr.vmem [resolvable:$true] %s2101_s23 }
  0x27   : > { %2517 = vmatprep.subr.msk.bf16.mxu0 %vm551_vm0, %v2911_v20  ;;  %vm782_vm9 = vmand %vm2934_vm5, %vm779_vm8  ;;  %s3354_s17 = scalar_lea.sflag [#allocation3], %s445_s25  ;;  %s2609_s1 = scalar_lea.vmem %s3346_s23, 1024 }
  0x28   : > { %vm2965_vm12 = vmand %vm739_vm10, %vm745_vm11  ;;  %p2610_p13 = scmp.ne.s32.totalorder %s3346_s23, %s2609_s1  ;;  %s2705_s20 = smov [#allocation2]  }
  0x29   : > { %vm762_vm14 = vmand %vm2965_vm12, %vm756_vm6  ;;  %s2613_s28 = sshll.u32 %s2705_s20, 4  ;;  %s2614_s28 = int_to_ptr.vmem [resolvable:$false] %s2613_s28 }
  0x2a   : > { %vm785_vm15 = vmand %vm2965_vm12, %vm779_vm8  ;;  %p2611_p0 = pnand %p2610_p13, %p2829_p3  ;;  %s2615_s29 = scalar_lea.vmem %s2614_s28, 2048 }
  0x2b   : > { %p2616_p2 = scmp.lt.s32.totalorder %s3346_s23, %s2614_s28  ;;  %p2617_p4 = scmp.lt.s32.totalorder %s2615_s29, %s2609_s1 }
  0x2c   : > { %2369 = vmatmul.mubr.msk.bf16.gmra.mxu0 %vm523_vm2, %v2598_v4  ;;  %p2612_p1 = pneg %p2611_p0 }
  0x2d   : > { %2372 = vmatprep.mubr.msk.bf16.mxu0 %vm2704_vm1, %v2703_v1  ;;  %p2618_p5 = por %p2617_p4, %p2616_p2 }
  0x2f   : > { %p2619_p6 = pnand %p2618_p5, %p2612_p1 }
  0x34   : > { %2373 = vmatmul.mubr.msk.bf16.gmra.mxu0 %vm523_vm2, %v2599_v5 }
  0x35   : > { %2376 = vmatprep.mubr.msk.bf16.mxu0 %vm2704_vm1, %v2703_v1 }
  0x3c   : > { %2377 = vmatmul.mubr.msk.bf16.gmra.mxu0 %vm523_vm2, %v2600_v6  ;;  %v730_v6 = vadd.s32 2, %v2921_v23 }
  0x3d   : > { %2380 = vmatprep.mubr.msk.bf16.mxu0 %vm2704_vm1, %v2703_v1 }
  0x3e   : > { %vm746_vm3 = vcmp.le.s32.totalorder %v730_v6, 16 }
  0x44   : > { %2381 = vmatmul.mubr.msk.bf16.gmra.mxu0 %vm523_vm2, %v2601_v7 }
  0x45   : > { %2384 = vmatprep.mubr.msk.bf16.mxu0 %vm2704_vm1, %v2703_v1 }
  0x4c   : > { %2385 = vmatmul.mubr.msk.bf16.gmra.mxu0 %vm523_vm2, %v2602_v8 }
  0x4d   : > { %2388 = vmatprep.mubr.msk.bf16.mxu0 %vm2704_vm1, %v2703_v1 }
  0x54   : > { %2389 = vmatmul.mubr.msk.bf16.gmra.mxu0 %vm523_vm2, %v2603_v9 }
  0x55   : > { %2392 = vmatprep.mubr.msk.bf16.mxu0 %vm2704_vm1, %v2703_v1 }
  0x5c   : > { %2393 = vmatmul.mubr.msk.bf16.gmra.mxu0 %vm523_vm2, %v2604_v10 }
  0x5d   : > { %2396 = vmatprep.mubr.msk.bf16.mxu0 %vm2704_vm1, %v2703_v1  ;;  %vm740_vm1 = vcmp.ge.s32.totalorder %v730_v6, 1 }
  0x5e   : > { %vm2993_vm4 = vmand %vm740_vm1, %vm746_vm3 }
  0x64   : > { %2397 = vmatmul.mubr.msk.bf16.gmra.mxu0 %vm523_vm2, %v2605_v11 }
  0xe4   : > { %v589_v24 = vpop.f32.mrf.mxu0 }
  0xe5   : > { %v667_v26 = vmul.f32 %v2919_v22, %v589_v24 }
  0xe6   : > { %v2366_v28 = vpop.f32.mrf.mxu0 }
  0xe7   : > { %v692_v29 = vadd.f32 %v2926_v25, %v667_v26 }
  0xe8   : > { %v592_v30 = vpop.f32.mrf.mxu0 }
  0xe9   : > { %v668_v32 = vmul.f32 %v2919_v22, %v592_v30  ;;  %v710_v35 = vmax.f32 %v692_v29, 0.0 }
  0xea   : > { %v2367_v34 = vpop.f32.mrf.mxu0 }
  0xeb   : > { %v693_v36 = vadd.f32 %v2926_v25, %v668_v32  ;;  %v798_v42 = vsel %vm759_vm7, %v710_v35, 0.0  ;;  %vm765_vm7 = vmand %vm2993_vm4, %vm756_vm6 }
  0xec   : > { %v597_v37 = vpop.f32.mrf.mxu0 }
  0xed   : > { %v711_v38 = vmax.f32 %v693_v36, 0.0  ;;  %v669_v39 = vmul.f32 %v2919_v22, %v597_v37 }
  0xee   : > { %v2370_v40 = vpop.f32.mrf.mxu0 }
  0xef   : > { %v799_v43 = vsel %vm2934_vm5, %v711_v38, 0.0  ;;  %v694_v44 = vadd.f32 %v2926_v25, %v669_v39  ;;  %vm887_vm5 = vcmask 1046528  }
  0xf0   : > { %v2954_v45 = vpack.c.bf16 %v799_v43, %v798_v42  ;;  %v600_v46 = vpop.f32.mrf.mxu0 }
  0xf1   : > { %v712_v47 = vmax.f32 %v694_v44, 0.0  ;;  %v670_v48 = vmul.f32 %v2919_v22, %v600_v46  ;;  %v993_v44 = vsel %vm551_vm0, %v2891_v12, 0 }
  0xf2   : > { %v2371_v49 = vpop.f32.mrf.mxu0  ;;  %v834_v50 = vshll.u32 %v2954_v45, 16  ;;  %v832_v59 = vshrl.u32 %v2954_v45, 16 }
  0xf3   : > { %v800_v51 = vsel %vm782_vm9, %v712_v47, 0.0  ;;  %v695_v52 = vadd.f32 %v2926_v25, %v670_v48  ;;  %v731_v48 = vadd.s32 3, %v2921_v23  ;;  %v3020_v49 = vld [vmem:[%s3409_s4 + $0x4] sm:$0x3]  ;;  %vm788_vm9 = vmand %vm2993_vm4, %vm779_vm8 }
  0xf4   : > { %v2963_v53 = vpack.c.bf16 %v800_v51, %v800_v51  ;;  %v605_v54 = vpop.f32.mrf.mxu0  ;;  %v836_v55 = vrot.slane %v834_v50, 1 }
  0xf5   : > { %v671_v57 = vmul.f32 %v2919_v22, %v605_v54  ;;  %v713_v61 = vmax.f32 %v695_v52, 0.0  ;;  %vm741_vm10 = vcmp.ge.s32.totalorder %v731_v48, 1  ;;  %vm747_vm11 = vcmp.le.s32.totalorder %v731_v48, 16 }
  0xf6   : > { %v2374_v58 = vpop.f32.mrf.mxu0  ;;  %v839_v60 = vshll.u32 %v2963_v53, 16  ;;  %v837_v0 = vor.u32 %v836_v55, %v832_v59 }
  0xf7   : > { %v696_v62 = vadd.f32 %v2926_v25, %v671_v57  ;;  %v801_v7 = vsel %vm762_vm14, %v713_v61, 0.0 }
  0xf8   : > { %v608_v63 = vpop.f32.mrf.mxu0  ;;  %v841_v1 = vrot.slane %v839_v60, 1 }
  0xf9   : > { %v714_v2 = vmax.f32 %v696_v62, 0.0  ;;  %v672_v3 = vmul.f32 %v2919_v22, %v608_v63 }
  0xfa   : > { %v2375_v4 = vpop.f32.mrf.mxu0  ;;  %v842_v5 = vsel %vm830_vm13, %v837_v0, %v841_v1 }
  0xfb   : > { %v802_v8 = vsel %vm2965_vm12, %v714_v2, 0.0  ;;  %v697_v9 = vadd.f32 %v2926_v25, %v672_v3  ;;  %2402 = vmatprep.mubr.msk.bf16.mxu1 %vm523_vm2, %v842_v5  ;;  %vm3038_vm12 = vmand %vm741_vm10, %vm747_vm11 }
  0xfc   : > { %v2984_v10 = vpack.c.bf16 %v802_v8, %v801_v7  ;;  %v613_v11 = vpop.f32.mrf.mxu0  ;;  %vm768_vm14 = vmand %vm3038_vm12, %vm756_vm6 }
  0xfd   : > { %v715_v13 = vmax.f32 %v697_v9, 0.0  ;;  %v673_v14 = vmul.f32 %v2919_v22, %v613_v11  ;;  %v1514_v9 = vsel %vm551_vm0, %v2911_v20, 0 }
  0xfe   : > { %v2378_v15 = vpop.f32.mrf.mxu0  ;;  %v846_v16 = vshll.u32 %v2984_v10, 16  ;;  %v891_v34 = vrot.slane %v2984_v10, 1  ;;  %v844_v35 = vshrl.u32 %v2984_v10, 16 }
  0xff   : > { %v803_v17 = vsel %vm785_vm15, %v715_v13, 0.0  ;;  %v698_v19 = vadd.f32 %v2926_v25, %v673_v14  ;;  %vm791_vm15 = vmand %vm3038_vm12, %vm779_vm8 }
 0x100   : > { %v819_v21 = vpack.c.bf16 %v803_v17, %v803_v17  ;;  %v616_v24 = vpop.f32.mrf.mxu0  ;;  %v848_v26 = vrot.slane %v846_v16, 1  ;;  %v732_v16 = vadd.s32 4, %v2921_v23 }
 0x101   : > { %v674_v29 = vmul.f32 %v2919_v22, %v616_v24  ;;  %v716_v36 = vmax.f32 %v698_v19, 0.0 }
 0x102   : > { %v851_v30 = vshll.u32 %v819_v21, 16  ;;  %v892_v31 = vrot.slane %v819_v21, 1  ;;  %v2379_v32 = vpop.f32.mrf.mxu0  ;;  %v849_v41 = vor.u32 %v848_v26, %v844_v35  ;;  %vm742_vm1 = vcmp.ge.s32.totalorder %v732_v16, 1 }
 0x103   : > { %v699_v37 = vadd.f32 %v2926_v25, %v674_v29  ;;  %v804_v50 = vsel %vm765_vm7, %v716_v36, 0.0  ;;  %vm748_vm3 = vcmp.le.s32.totalorder %v732_v16, 16 }
 0x104   : > { %v853_v38 = vrot.slane %v851_v30, 1  ;;  %v621_v39 = vpop.f32.mrf.mxu0  ;;  %v3006_v40 = vsel %vm887_vm5, %v891_v34, %v892_v31 }
 0x105   : > { %v717_v42 = vmax.f32 %v699_v37, 0.0  ;;  %v675_v43 = vmul.f32 %v2919_v22, %v621_v39  ;;  %2452 = vmatprep.mubr.msk.bf16.mxu0 %vm523_vm2, %v3006_v40 }
 0x106   : > { %v2382_v46 = vpop.f32.mrf.mxu0  ;;  %v3014_v47 = vsel %vm830_vm13, %v849_v41, %v853_v38  ;;  %v889_v38 = vrot.slane %v2963_v53, 1 }
 0x107   : > { %v805_v51 = vsel %vm2993_vm4, %v717_v42, 0.0  ;;  %v700_v52 = vadd.f32 %v2926_v25, %v675_v43  ;;  %2403 = vmatmul.mubr.msk.bf16.vlgmr.msra.gmra.mxu1 %vm523_vm2, %v3014_v47  ;;  %vm3076_vm4 = vmand %vm742_vm1, %vm748_vm3 }
 0x108   : > { %v3027_v12 = vpack.c.bf16 %v805_v51, %v804_v50  ;;  %v624_v54 = vpop.f32.mrf.mxu0  ;;  %2411 = vmatpush3.bf16.msra.mxu1 %v993_v44  ;;  %vm771_vm7 = vmand %vm3076_vm4, %vm756_vm6 }
 0x109   : > { %v718_v55 = vmax.f32 %v700_v52, 0.0  ;;  %v676_v56 = vmul.f32 %v2919_v22, %v624_v54  ;;  %2512 = vmatprep.subr.msk.bf16.mxu1 %vm551_vm0, %v3020_v49 }
 0x10a   : > { %v2383_v57 = vpop.f32.mrf.mxu0  ;;  %v858_v58 = vshll.u32 %v3027_v12, 16  ;;  %v894_v5 = vrot.slane %v3027_v12, 1  ;;  %v856_v6 = vshrl.u32 %v3027_v12, 16 }
 0x10b   : > { %v806_v59 = vsel %vm788_vm9, %v718_v55, 0.0  ;;  %v701_v60 = vadd.f32 %v2926_v25, %v676_v56  ;;  %vm794_vm9 = vmand %vm3076_vm4, %vm779_vm8 }
 0x10c   : > { %v821_v61 = vpack.c.bf16 %v806_v59, %v806_v59  ;;  %v629_v62 = vpop.f32.mrf.mxu0  ;;  %v860_v63 = vrot.slane %v858_v58, 1  ;;  %v733_v59 = vadd.s32 5, %v2921_v23 }
 0x10d   : > { %v677_v1 = vmul.f32 %v2919_v22, %v629_v62  ;;  %v719_v7 = vmax.f32 %v701_v60, 0.0 }
 0x10e   : > { %v863_v2 = vshll.u32 %v821_v61, 16  ;;  %v895_v3 = vrot.slane %v821_v61, 1  ;;  %v2386_v4 = vpop.f32.mrf.mxu0  ;;  %v861_v15 = vor.u32 %v860_v63, %v856_v6  ;;  %vm743_vm10 = vcmp.ge.s32.totalorder %v733_v59, 1 }
 0x10f   : > { %v702_v8 = vadd.f32 %v2926_v25, %v677_v1  ;;  %v807_v24 = vsel %vm768_vm14, %v719_v7, 0.0  ;;  %vm749_vm11 = vcmp.le.s32.totalorder %v733_v59, 16 }
 0x110   : > { %v865_v11 = vrot.slane %v863_v2, 1  ;;  %v632_v13 = vpop.f32.mrf.mxu0  ;;  %v3053_v14 = vsel %vm887_vm5, %v894_v5, %v895_v3 }
 0x111   : > { %v720_v17 = vmax.f32 %v702_v8, 0.0  ;;  %v678_v19 = vmul.f32 %v2919_v22, %v632_v13  ;;  %2453 = vmatmul.mubr.msk.bf16.vlgmr.msra.gmra.mxu0 %vm523_vm2, %v3053_v14 }
 0x112   : > { %v2387_v20 = vpop.f32.mrf.mxu0  ;;  %v3060_v21 = vsel %vm830_vm13, %v861_v15, %v865_v11  ;;  %2471 = vmatpush3.bf16.msra.mxu0 %v1514_v9 }
 0x113   : > { %v808_v26 = vsel %vm3038_vm12, %v720_v17, 0.0  ;;  %v703_v28 = vadd.f32 %v2926_v25, %v678_v19  ;;  %2406 = vmatprep.mubr.msk.bf16.mxu1 %vm523_vm2, %v3060_v21  ;;  %vm3113_vm12 = vmand %vm743_vm10, %vm749_vm11  ;;  %v1073_v17 = vsel %vm551_vm0, %v3020_v49, 0 }
 0x114   : > { %v3067_v29 = vpack.c.bf16 %v808_v26, %v807_v24  ;;  %v637_v30 = vpop.f32.mrf.mxu0  ;;  %v2226_v26 = vld [vmem:[%s3409_s4 + $0x8] sm:$0xf]  ;;  %vm774_vm14 = vmand %vm3113_vm12, %vm756_vm6 }
 0x115   : > { %v721_v31 = vmax.f32 %v703_v28, 0.0  ;;  %v679_v32 = vmul.f32 %v2919_v22, %v637_v30  ;;  %vm797_vm6 = vmand %vm3113_vm12, %vm779_vm8  ;;  %vm1837_vm8 = vsmask.f32 3328 }
 0x116   : > { %v2390_v34 = vpop.f32.mrf.mxu0  ;;  %v870_v35 = vshll.u32 %v3067_v29, 16  ;;  %v897_v51 = vrot.slane %v3067_v29, 1  ;;  %v868_v52 = vshrl.u32 %v3067_v29, 16 }
 0x117   : > { %v809_v36 = vsel %vm791_vm15, %v721_v31, 0.0  ;;  %v704_v37 = vadd.f32 %v2926_v25, %v679_v32 }
 0x118   : > { %v823_v39 = vpack.c.bf16 %v809_v36, %v809_v36  ;;  %v640_v41 = vpop.f32.mrf.mxu0  ;;  %v872_v42 = vrot.slane %v870_v35, 1 }
 0x119   : > { %v722_v43 = vmax.f32 %v704_v37, 0.0  ;;  %v680_v44 = vmul.f32 %v2919_v22, %v640_v41 }
 0x11a   : > { %v875_v46 = vshll.u32 %v823_v39, 16  ;;  %v898_v48 = vrot.slane %v823_v39, 1  ;;  %v2391_v50 = vpop.f32.mrf.mxu0  ;;  %v873_v58 = vor.u32 %v872_v42, %v868_v52 }
 0x11b   : > { %v705_v54 = vadd.f32 %v2926_v25, %v680_v44  ;;  %v810_v60 = vsel %vm771_vm7, %v722_v43, 0.0 }
 0x11c   : > { %v877_v55 = vrot.slane %v875_v46, 1  ;;  %v645_v56 = vpop.f32.mrf.mxu0  ;;  %v3089_v57 = vsel %vm887_vm5, %v897_v51, %v898_v48 }
 0x11d   : > { %v723_v61 = vmax.f32 %v705_v54, 0.0  ;;  %v681_v62 = vmul.f32 %v2919_v22, %v645_v56  ;;  %2456 = vmatprep.mubr.msk.bf16.mxu0 %vm523_vm2, %v3089_v57 }
 0x11e   : > { %v3096_v63 = vsel %vm830_vm13, %v873_v58, %v877_v55  ;;  %v2394_v0 = vpop.f32.mrf.mxu0 }
 0x11f   : > { %v811_v1 = vsel %vm3076_vm4, %v723_v61, 0.0  ;;  %v706_v2 = vadd.f32 %v2926_v25, %v681_v62  ;;  %2407 = vmatmul.mubr.msk.bf16.gmra.mxu1 %vm523_vm2, %v3096_v63  ;;  %v1171_v0 = vsel %vm551_vm0, %v2226_v26, 0 }
 0x120   : > { %v3103_v23 = vpack.c.bf16 %v811_v1, %v810_v60  ;;  %2412 = vmatprep.mubr.msk.bf16.mxu1 %vm523_vm2, %v2954_v45  ;;  %v648_v3 = vpop.f32.mrf.mxu0 }
 0x121   : > { %v724_v4 = vmax.f32 %v706_v2, 0.0  ;;  %v682_v5 = vmul.f32 %v2919_v22, %v648_v3  ;;  %v2269_v3 = vld [vmem:[%s2860_s30 + $0x18] sm:$0xf] }
 0x122   : > { %v2395_v6 = vpop.f32.mrf.mxu0  ;;  %v1154_v11 = vshll.u32 %v3103_v23, 16  ;;  %v1165_v15 = vrot.slane %v3103_v23, 1  ;;  %v1152_v31 = vshrl.u32 %v3103_v23, 16  ;;  %v1868_v9 = vshll.u32 %v2269_v3, 16 }
 0x123   : > { %v812_v7 = vsel %vm794_vm9, %v724_v4, 0.0  ;;  %v707_v8 = vadd.f32 %v2926_v25, %v682_v5  ;;  %v2270_v4 = vld [vmem:[%s2860_s30 + $0x1c] sm:$0xf] }
 0x124   : > { %v825_v13 = vpack.c.bf16 %v812_v7, %v812_v7  ;;  %v653_v16 = vpop.f32.mrf.mxu0  ;;  %v1156_v32 = vrot.slane %v1154_v11, 1 }
 0x125   : > { %v725_v19 = vmax.f32 %v707_v8, 0.0  ;;  %v683_v20 = vmul.f32 %v2919_v22, %v653_v16  ;;  %v2268_v8 = vld [vmem:[%s2860_s30 + $0x14] sm:$0xf]  ;;  %v1874_v16 = vshll.u32 %v2270_v4, 16 }
 0x126   : > { %v1166_v24 = vrot.slane %v825_v13, 1  ;;  %v2398_v28 = vpop.f32.mrf.mxu0  ;;  %v1159_v30 = vshll.u32 %v825_v13, 16  ;;  %v1157_v44 = vor.u32 %v1156_v32, %v1152_v31 }
 0x127   : > { %2413 = vmatmul.mubr.msk.bf16.vlgmr.msra.gmra.mxu1 %vm523_vm2, %v2984_v10  ;;  %v708_v49 = vadd.f32 %v2926_v25, %v683_v20  ;;  %v813_v35 = vsel %vm774_vm14, %v725_v19, 0.0  ;;  %v1870_v20 = vrot.slane %v1868_v9, 5 }
 0x128   : > { %2421 = vmatpush3.bf16.msra.mxu1 %v1073_v17  ;;  %2416 = vmatprep.mubr.msk.bf16.mxu1 %vm523_vm2, %v3027_v12  ;;  %v3136_v34 = vsel %vm887_vm5, %v1165_v15, %v1166_v24  ;;  %v656_v27 = vpop.f32.mrf.mxu0  ;;  %v1161_v41 = vrot.slane %v1159_v30, 1  ;;  %v1860_v15 = vshll.u32 %v2268_v8, 16  ;;  %v2271_v17 = vld [vmem:[%s2860_s30 + $0x20] sm:$0xf]  ;;  %v1878_v24 = vshrl.u32 %v2270_v4, 16 }
 0x129   : > { %2457 = vmatmul.mubr.msk.bf16.gmra.mxu0 %vm523_vm2, %v3136_v34  ;;  %2513 = vmatprep.subr.msk.bf16.mxu1 %vm551_vm0, %v2226_v26  ;;  %v726_v36 = vmax.f32 %v708_v49, 0.0  ;;  %v684_v37 = vmul.f32 %v2919_v22, %v656_v27  ;;  %v888_v22 = vrot.slane %v2954_v45, 1  ;;  %v2232_v45 = vcombine.low %v2226_v26, %v2226_v26  ;;  %v1710_v30 = vld [vmem:[%s3412_s7] sm:$0x3] }
 0x12a   : > { %2472 = vmatprep.mubr.msk.bf16.mxu0 %vm523_vm2, %v3060_v21  ;;  %v2399_v39 = vpop.f32.mrf.mxu0  ;;  %v1936_v49 = vld [vmem:[%s3415_s10] sm:$0x3]  ;;  %v1862_v32 = vrot.slane %v1860_v15, 5  ;;  %v1876_v27 = vrot.slane %v1874_v16, 5  ;;  %2519 = vmatprep.subr.msk.bf16.mxu0 %vm551_vm0, %v1710_v30 }
 0x12b   : > { %v814_v42 = vsel %vm3113_vm12, %v726_v36, 0.0  ;;  %v709_v43 = vadd.f32 %v2926_v25, %v684_v37  ;;  %v890_v51 = vsel %vm887_vm5, %v888_v22, %v889_v38  ;;  %v1162_v25 = vsel %vm830_vm13, %v1157_v44, %v1161_v41  ;;  %v2272_v39 = vld [vmem:[%s2860_s30 + $0x24] sm:$0xf]  ;;  %v2273_v44 = vld [vmem:[%s2860_s30 + $0x28] sm:$0xf] }
 0x12c   : > { %v826_v46 = vpack.c.bf16 %v814_v42, %v813_v35  ;;  %v1249_v62 = vrot.slane %v2232_v45, 2  ;;  %v1962_v35 = vsel %vm551_vm0, %v1936_v49, 0  ;;  %v1880_v37 = vrot.slane %v1878_v24, 4 }
 0x12d   : > { %v727_v53 = vmax.f32 %v709_v43, 0.0  ;;  %v1884_v38 = vshll.u32 %v2271_v17, 16  ;;  %v1724_v41 = vsel %vm551_vm0, %v1710_v30, 0 }
 0x12e   : > { %v1412_v48 = vshrl.u32 %v826_v46, 16  ;;  %v1414_v50 = vshll.u32 %v826_v46, 16  ;;  %v1425_v55 = vrot.slane %v826_v46, 1  ;;  %v1254_v2 = vsel %vm551_vm0, %v1249_v62, 0 }
 0x12f   : > { %2417 = vmatmul.mubr.msk.bf16.gmra.mxu1 %vm523_vm2, %v3067_v29  ;;  %v815_v52 = vsel %vm797_vm6, %v727_v53, 0.0  ;;  %v1881_v53 = vor.u32 %v1880_v37, %v1876_v27 }
 0x130   : > { %2422 = vmatprep.mubr.msk.bf16.mxu1 %vm523_vm2, %v890_v51  ;;  %v827_v54 = vpack.c.bf16 %v815_v52, %v815_v52  ;;  %v1416_v33 = vrot.slane %v1414_v50, 1  ;;  %v1892_v50 = vshll.u32 %v2272_v39, 16  ;;  %v2275_v51 = vld [vmem:[%s2860_s30 + $0x30] sm:$0xf]  ;;  %v2276_v52 = vld [vmem:[%s2860_s30 + $0x34] sm:$0xf] }
 0x131   : > { %2473 = vmatmul.mubr.msk.bf16.vlgmr.msra.gmra.mxu0 %vm523_vm2, %v3096_v63  ;;  %v1882_v45 = vrot.slane %v1881_v53, 4  ;;  %v1926_v4 = vshrl.u32 %v2276_v52, 16 }
 0x132   : > { %v1419_v56 = vshll.u32 %v827_v54, 16  ;;  %v1426_v58 = vrot.slane %v827_v54, 1  ;;  %2476 = vmatprep.mubr.msk.bf16.mxu0 %vm523_vm2, %v1162_v25  ;;  %v1417_v59 = vor.u32 %v1416_v33, %v1412_v48  ;;  %2491 = vmatpush3.bf16.msra.mxu0 %v1724_v41  ;;  %v1886_v48 = vrot.slane %v1884_v38, 5 }
 0x133   : > { %v1898_v33 = vshll.u32 %v2273_v44, 16  ;;  %v1928_v8 = vrot.slane %v1926_v4, 4 }
 0x134   : > { %v1421_v60 = vrot.slane %v1419_v56, 1  ;;  %v1427_v61 = vsel %vm887_vm5, %v1425_v55, %v1426_v58  ;;  %v1902_v55 = vshrl.u32 %v2273_v44, 16  ;;  %v2274_v56 = vld [vmem:[%s2860_s30 + $0x2c] sm:$0xf]  ;;  %v1894_v58 = vrot.slane %v1892_v50, 5 }
 0x136   : > { %v1422_v1 = vsel %vm830_vm13, %v1417_v59, %v1421_v60  ;;  %vm1838_vm13 = vsmask.f32 7440  ;;  %v1913_v59 = vshrl.u32 %v2275_v51, 16  ;;  %v1916_v60 = vshll.u32 %v2275_v51, 16 }
 0x137   : > { %2423 = vmatmul.mubr.msk.bf16.vlgmr.msra.gmra.mxu1 %vm523_vm2, %v3006_v40  ;;  %v2242_v40 = vld [vmem:[%s3409_s4 + $0x14] sm:$0x3]  ;;  %vm3223_vm5 = vmor %vm1837_vm8, %vm1838_vm13 }
 0x138   : > { %2431 = vmatpush3.bf16.msra.mxu1 %v1171_v0  ;;  %2426 = vmatprep.mubr.msk.bf16.mxu1 %vm523_vm2, %v3053_v14  ;;  %v1908_v0 = vshll.u32 %v2274_v56, 16 }
 0x139   : > { %2514 = vmatprep.subr.msk.bf16.mxu1 %vm551_vm0, %v1249_v62  ;;  %2477 = vmatmul.mubr.msk.bf16.gmra.mxu0 %vm523_vm2, %v1422_v1  ;;  %v1904_v62 = vrot.slane %v1902_v55, 4  ;;  %v2277_v1 = vld [vmem:[%s2860_s30 + $0x38] sm:$0xf] }
 0x13f   : > { %2427 = vmatmul.mubr.msk.bf16.gmra.mxu1 %vm523_vm2, %v3089_v57 }
 0x140   : > { %2432 = vmatprep.mubr.msk.bf16.mxu1 %vm523_vm2, %v2984_v10  ;;  %v1431_v10 = vsel %vm551_vm0, %v2907_v18, 0 }
 0x147   : > { %2433 = vmatmul.mubr.msk.bf16.vlgmr.msra.gmra.mxu1 %vm523_vm2, %v3027_v12 }
 0x148   : > { %2441 = vmatpush3.bf16.msra.mxu1 %v1254_v2  ;;  %2436 = vmatprep.mubr.msk.bf16.mxu1 %vm523_vm2, %v3067_v29  ;;  %v1922_v2 = vshll.u32 %v2276_v52, 16 }
 0x149   : > { %2516 = vmatprep.subr.msk.bf16.mxu1 %vm551_vm0, %v2907_v18  ;;  %v1593_v18 = vsel %vm551_vm0, %v2242_v40, 0 }
 0x14f   : > { %2437 = vmatmul.mubr.msk.bf16.gmra.mxu1 %vm523_vm2, %v3103_v23 }
 0x150   : > { %2442 = vmatprep.mubr.msk.bf16.mxu1 %vm523_vm2, %v3014_v47  ;;  %v2266_v47 = vld [vmem:[%s2860_s30 + $0xc] sm:$0xf] }
 0x157   : > { %2443 = vmatmul.mubr.msk.bf16.vlgmr.msra.gmra.mxu1 %vm523_vm2, %v3060_v21  ;;  %v1841_v21 = vshrl.u32 %v2266_v47, 16 }
 0x158   : > { %2461 = vmatpush3.bf16.msra.mxu1 %v1431_v10  ;;  %2446 = vmatprep.mubr.msk.bf16.mxu1 %vm523_vm2, %v3096_v63  ;;  %v1887_v10 = vsel %vm3223_vm5, %v1882_v45, %v1886_v48 }
 0x159   : > { %2518 = vmatprep.subr.msk.bf16.mxu1 %vm551_vm0, %v2242_v40  ;;  %v1843_v5 = vrot.slane %v1841_v21, 4 }
 0x15f   : > { %2447 = vmatmul.mubr.msk.bf16.gmra.mxu1 %vm523_vm2, %v1162_v25 }
 0x160   : > { %2462 = vmatprep.mubr.msk.bf16.mxu1 %vm523_vm2, %v3027_v12  ;;  %v2267_v12 = vld [vmem:[%s2860_s30 + $0x10] sm:$0xf] }
 0x161   : > { %v1850_v63 = vshll.u32 %v2267_v12, 16 }
 0x163   : > { %v1852_v6 = vrot.slane %v1850_v63, 5  ;;  %v1924_v63 = vrot.slane %v1922_v2, 5 }
 0x167   : > { %2463 = vmatmul.mubr.msk.bf16.vlgmr.msra.gmra.mxu1 %vm523_vm2, %v3067_v29  ;;  %v1844_v29 = vshll.u32 %v2266_v47, 16  ;;  %v1918_v47 = vrot.slane %v1916_v60, 5 }
 0x168   : > { %2481 = vmatpush3.bf16.msra.mxu1 %v1593_v18  ;;  %2466 = vmatprep.mubr.msk.bf16.mxu1 %vm523_vm2, %v3103_v23  ;;  %v1854_v23 = vshrl.u32 %v2267_v12, 16  ;;  %v1915_v18 = vrot.slane %v1913_v59, 4 }
 0x169   : > { %2520 = vmatprep.subr.msk.bf16.mxu1 %vm551_vm0, %v1936_v49  ;;  %vm2075_vm0 = vcmask 130048  }
 0x16a   : > { %v1856_v7 = vrot.slane %v1854_v23, 4 }
 0x16c   : > { %v1857_v13 = vor.u32 %v1856_v7, %v1852_v6 }
 0x16e   : > { %v1858_v28 = vrot.slane %v1857_v13, 4 }
 0x16f   : > { %2467 = vmatmul.mubr.msk.bf16.gmra.mxu1 %vm523_vm2, %v826_v46  ;;  %v1889_v46 = vshrl.u32 %v2272_v39, 16 }
 0x170   : > { %2482 = vmatprep.mubr.msk.bf16.mxu1 %vm523_vm2, %v3053_v14  ;;  %v1846_v14 = vrot.slane %v1844_v29, 5  ;;  %v1863_v42 = vsel %vm3223_vm5, %v1858_v28, %v1862_v32  ;;  %v1910_v29 = vrot.slane %v1908_v0, 5 }
 0x171   : > { %v1891_v54 = vrot.slane %v1889_v46, 4 }
 0x172   : > { %v1847_v11 = vor.u32 %v1846_v14, %v1843_v5  ;;  %v1932_v5 = vshll.u32 %v2277_v1, 16 }
 0x173   : > { %v1895_v40 = vor.u32 %v1894_v58, %v1891_v54 }
 0x174   : > { %v1848_v26 = vrot.slane %v1847_v11, 4  ;;  %v1929_v11 = vor.u32 %v1928_v8, %v1924_v63  ;;  %v1934_v13 = vrot.slane %v1932_v5, 5 }
 0x175   : > { %v1896_v23 = vrot.slane %v1895_v40, 4 }
 0x176   : > { %v1853_v36 = vsel %vm3223_vm5, %v1848_v26, %v1852_v6  ;;  %v1930_v16 = vrot.slane %v1929_v11, 4 }
 0x177   : > { %2483 = vmatmul.mubr.msk.bf16.vlgmr.msra.gmra.mxu1 %vm523_vm2, %v3089_v57  ;;  %v1865_v57 = vshrl.u32 %v2269_v3, 16  ;;  %v2278_v22 = vcombine.low %v1853_v36, %v1863_v42  ;;  %v1919_v3 = vor.u32 %v1918_v47, %v1915_v18 }
 0x178   : > { %2486 = vmatprep.mubr.msk.bf16.mxu1 %vm523_vm2, %v3136_v34  ;;  %2501 = vmatpush3.bf16.msra.mxu1 %v1962_v35  ;;  %v1935_v17 = vsel %vm3223_vm5, %v1930_v16, %v1934_v13 }
 0x179   : > { %v1867_v19 = vrot.slane %v1865_v57, 4  ;;  %v1920_v7 = vrot.slane %v1919_v3, 4 }
 0x17b   : > { %v1871_v34 = vor.u32 %v1870_v20, %v1867_v19  ;;  %v1925_v15 = vsel %vm3223_vm5, %v1920_v7, %v1924_v63 }
 0x17c   : > { %v2281_v19 = vcombine.low %v1925_v15, %v1935_v17 }
 0x17d   : > { %v1872_v43 = vrot.slane %v1871_v34, 4 }
 0x17f   : > { %2487 = vmatmul.mubr.msk.bf16.gmra.mxu1 %vm523_vm2, %v1427_v61  ;;  %v1877_v25 = vsel %vm3223_vm5, %v1872_v43, %v1876_v27  ;;  %v1900_v61 = vrot.slane %v1898_v33, 5 }
 0x180   : > { %2502 = vmatprep.mubr.msk.bf16.mxu1 %vm523_vm2, %v2278_v22  ;;  %v2279_v12 = vcombine.low %v1877_v25, %v1887_v10 }
 0x181   : > { %v1905_v21 = vor.u32 %v1904_v62, %v1900_v61  ;;  %v1901_v6 = vsel %vm3223_vm5, %v1896_v23, %v1900_v61 }
 0x183   : > { %v1906_v14 = vrot.slane %v1905_v21, 4 }
 0x185   : > { %v1911_v57 = vsel %vm3223_vm5, %v1906_v14, %v1910_v29 }
 0x186   : > { %v2280_v9 = vcombine.low %v1901_v6, %v1911_v57 }
 0x187   : > { %2503 = vmatmul.mubr.msk.bf16.vlgmr.msra.gmra.mxu1 %vm523_vm2, %v2279_v12 }
 0x188   : > { %2506 = vmatprep.mubr.msk.bf16.mxu1 %vm523_vm2, %v2280_v9 }
 0x18f   : > { %2507 = vmatmul.mubr.msk.bf16.gmra.mxu1 %vm523_vm2, %v2281_v19 }
 0x1c7   : > { %v2404_v20 = vpop.f32.mrf.mxu1 }
 0x1c9   : > { %v953_v24 = vpop.f32.mrf.mxu1 }
 0x1cb   : > { %v2405_v26 = vpop.f32.mrf.mxu1 }
 0x1cd   : > { %v956_v28 = vpop.f32.mrf.mxu1 }
 0x1d1   : > { %v2454_v60 = vpop.f32.mrf.mxu0 }
 0x1d3   : > { %v1369_v0 = vpop.f32.mrf.mxu0 }
 0x1d5   : > { %v2455_v10 = vpop.f32.mrf.mxu0 }
 0x1d7   : > { %v1372_v47 = vpop.f32.mrf.mxu0 }
 0x1df   : > { %v2408_v30 = vpop.f32.mrf.mxu1 }
 0x1e1   : > { %v969_v49 = vpop.f32.mrf.mxu1 }
 0x1e3   : > { %v2409_v32 = vpop.f32.mrf.mxu1 }
 0x1e5   : > { %v972_v34 = vpop.f32.mrf.mxu1 }
 0x1e7   : > { %v2414_v27 = vpop.f32.mrf.mxu1 }
 0x1e8   : > { %v1038_v35 = vadd.f32 %v2414_v27, %v2404_v20 }
 0x1e9   : > { %v1029_v36 = vpop.f32.mrf.mxu1  ;;  %v2458_v21 = vpop.f32.mrf.mxu0 }
 0x1ea   : > { %v1030_v37 = vadd.f32 %v1029_v36, %v953_v24 }
 0x1eb   : > { %v2415_v38 = vpop.f32.mrf.mxu1  ;;  %v1385_v23 = vpop.f32.mrf.mxu0 }
 0x1ec   : > { %v1041_v39 = vadd.f32 %v2415_v38, %v2405_v26 }
 0x1ed   : > { %v1032_v41 = vpop.f32.mrf.mxu1  ;;  %v3261_v5 = vpop.f32.mrf.mxu0 }
 0x1ee   : > { %v1033_v31 = vadd.f32 %v1032_v41, %v956_v28 }
 0x1ef   : > { %v2418_v42 = vpop.f32.mrf.mxu1  ;;  %v3263_v7 = vpop.f32.mrf.mxu0 }
 0x1f0   : > { %v1054_v43 = vadd.f32 %v2418_v42, %v2408_v30 }
 0x1f1   : > { %v1045_v44 = vpop.f32.mrf.mxu1  ;;  %v2474_v9 = vpop.f32.mrf.mxu0 }
 0x1f2   : > { %v1046_v46 = vadd.f32 %v1045_v44, %v969_v49 }
 0x1f3   : > { %v2419_v22 = vpop.f32.mrf.mxu1  ;;  %v1550_v19 = vpop.f32.mrf.mxu0 }
 0x1f4   : > { %v3257_v53 = vadd.f32 %v2419_v22, %v2409_v32 }
 0x1f5   : > { %v1048_v48 = vpop.f32.mrf.mxu1  ;;  %v2475_v27 = vpop.f32.mrf.mxu0 }
 0x1f6   : > { %v3259_v50 = vadd.f32 %v1048_v48, %v972_v34 }
 0x1f7   : > { %v2424_v51 = vpop.f32.mrf.mxu1 }
 0x1f8   : > { %v1142_v11 = vadd.f32 %v2424_v51, %v1038_v35 }
 0x1f9   : > { %v1109_v52 = vpop.f32.mrf.mxu1 }
 0x1fa   : > { %v1140_v15 = vadd.f32 %v1109_v52, %v1030_v37 }
 0x1fb   : > { %v2425_v25 = vpop.f32.mrf.mxu1 }
 0x1fc   : > { %v1143_v20 = vadd.f32 %v2425_v25, %v1041_v39  ;;  %v1553_v25 = vpop.f32.mrf.mxu0 }
 0x1fd   : > { %v1112_v54 = vpop.f32.mrf.mxu1 }
 0x1fe   : > { %v1141_v30 = vadd.f32 %v1112_v54, %v1033_v31 }
 0x1ff   : > { %v2428_v33 = vpop.f32.mrf.mxu1 }
 0x200   : > { %v1146_v36 = vadd.f32 %v2428_v33, %v1054_v43 }
 0x201   : > { %v1125_v55 = vpop.f32.mrf.mxu1 }
 0x202   : > { %v1144_v44 = vadd.f32 %v1125_v55, %v1046_v46 }
 0x203   : > { %v2429_v45 = vpop.f32.mrf.mxu1 }
 0x204   : > { %v1147_v54 = vadd.f32 %v2429_v45, %v3257_v53 }
 0x205   : > { %v1128_v56 = vpop.f32.mrf.mxu1 }
 0x207   : > { %v2434_v58 = vpop.f32.mrf.mxu1 }
 0x208   : > { %v1240_v16 = vadd.f32 %v2434_v58, %v1142_v11 }
 0x209   : > { %v1207_v59 = vpop.f32.mrf.mxu1 }
 0x20a   : > { %v1238_v24 = vadd.f32 %v1207_v59, %v1140_v15 }
 0x20b   : > { %v2435_v61 = vpop.f32.mrf.mxu1 }
 0x20c   : > { %v1241_v49 = vadd.f32 %v2435_v61, %v1143_v20  ;;  %v1145_v61 = vadd.f32 %v1128_v56, %v3259_v50 }
 0x20d   : > { %v1210_v62 = vpop.f32.mrf.mxu1 }
 0x20e   : > { %v1239_v38 = vadd.f32 %v1210_v62, %v1141_v30  ;;  %v2478_v62 = vpop.f32.mrf.mxu0 }
 0x20f   : > { %v2438_v1 = vpop.f32.mrf.mxu1 }
 0x210   : > { %v1244_v22 = vadd.f32 %v2438_v1, %v1146_v36 }
 0x211   : > { %v1223_v2 = vpop.f32.mrf.mxu1 }
 0x212   : > { %v1242_v52 = vadd.f32 %v1223_v2, %v1144_v44 }
 0x213   : > { %v2439_v40 = vpop.f32.mrf.mxu1 }
 0x214   : > { %v1245_v1 = vadd.f32 %v2439_v40, %v1147_v54 }
 0x215   : > { %v1226_v18 = vpop.f32.mrf.mxu1 }
 0x217   : > { %v2444_v12 = vpop.f32.mrf.mxu1 }
 0x218   : > { %v1323_v26 = vadd.f32 %v2444_v12, %v1240_v16  ;;  %v1243_v12 = vadd.f32 %v1226_v18, %v1145_v61  ;;  %v2257_v18 = vld [vmem:[%s3411_s6] ss:$0 sm:$0xff] }
 0x219   : > { %v1290_v29 = vpop.f32.mrf.mxu1 }
 0x21a   : > { %v1321_v32 = vadd.f32 %v1290_v29, %v1238_v24  ;;  %v1402_v42 = vadd.f32 %v2454_v60, %v1323_v26 }
 0x21b   : > { %v2445_v63 = vpop.f32.mrf.mxu1 }
 0x21c   : > { %v1324_v41 = vadd.f32 %v2445_v63, %v1241_v49  ;;  %v1400_v51 = vadd.f32 %v1369_v0, %v1321_v32  ;;  %v2256_v0 = vld [vmem:[%s3410_s5] ss:$0 sm:$0xff] }
 0x21d   : > { %v1293_v3 = vpop.f32.mrf.mxu1 }
 0x21e   : > { %v1322_v37 = vadd.f32 %v1293_v3, %v1239_v38  ;;  %v1403_v31 = vadd.f32 %v2455_v10, %v1324_v41 }
 0x21f   : > { %v2448_v4 = vpop.f32.mrf.mxu1 }
 0x220   : > { %v1327_v58 = vadd.f32 %v2448_v4, %v1244_v22  ;;  %v1401_v46 = vadd.f32 %v1372_v47, %v1322_v37  ;;  %v1566_v4 = vpop.f32.mrf.mxu0 }
 0x221   : > { %v1306_v14 = vpop.f32.mrf.mxu1 }
 0x222   : > { %v1325_v43 = vadd.f32 %v1306_v14, %v1242_v52  ;;  %v1406_v63 = vadd.f32 %v2458_v21, %v1327_v58 }
 0x223   : > { %v2449_v6 = vpop.f32.mrf.mxu1 }
 0x224   : > { %v1328_v53 = vadd.f32 %v2449_v6, %v1245_v1  ;;  %v1404_v50 = vadd.f32 %v1385_v23, %v1325_v43 }
 0x225   : > { %v1309_v8 = vpop.f32.mrf.mxu1 }
 0x226   : > { %v1326_v45 = vadd.f32 %v1309_v8, %v1243_v12  ;;  %v1407_v16 = vadd.f32 %v3261_v5, %v1328_v53  ;;  %v2479_v8 = vpop.f32.mrf.mxu0 }
 0x227   : > { %v2464_v57 = vpop.f32.mrf.mxu1 }
 0x228   : > { %v1500_v48 = vadd.f32 %v2464_v57, %v1402_v42  ;;  %v1405_v6 = vadd.f32 %v3263_v7, %v1326_v45  ;;  %v1569_v41 = vpop.f32.mrf.mxu0  ;;  %v2286_v45 = vld [vmem:[%s3416_s11] ss:$0 sm:$0xff] }
 0x229   : > { %v1467_v13 = vpop.f32.mrf.mxu1 }
 0x22a   : > { %v1498_v59 = vadd.f32 %v1467_v13, %v1400_v51  ;;  %v1583_v55 = vadd.f32 %v2474_v9, %v1500_v48 }
 0x22b   : > { %v2465_v17 = vpop.f32.mrf.mxu1 }
 0x22c   : > { %v1501_v60 = vadd.f32 %v2465_v17, %v1403_v31  ;;  %v1581_v3 = vadd.f32 %v1550_v19, %v1498_v59 }
 0x22d   : > { %v1470_v28 = vpop.f32.mrf.mxu1 }
 0x22e   : > { %v1499_v2 = vadd.f32 %v1470_v28, %v1401_v46  ;;  %v1584_v9 = vadd.f32 %v2475_v27, %v1501_v60 }
 0x22f   : > { %v2468_v34 = vpop.f32.mrf.mxu1 }
 0x230   : > { %v1504_v14 = vadd.f32 %v2468_v34, %v1406_v63  ;;  %v1582_v21 = vadd.f32 %v1553_v25, %v1499_v2 }
 0x231   : > { %v1483_v35 = vpop.f32.mrf.mxu1 }
 0x232   : > { %v1502_v40 = vadd.f32 %v1483_v35, %v1404_v50  ;;  %v1587_v24 = vadd.f32 %v2478_v62, %v1504_v14  ;;  %v3290_v14 = vld [vmem:[%s3413_s8] ss:$0 sm:$0xff] }
 0x233   : > { %v2469_v39 = vpop.f32.mrf.mxu1 }
 0x234   : > { %v1505_v26 = vadd.f32 %v2469_v39, %v1407_v16  ;;  %v1585_v49 = vadd.f32 %v1566_v4, %v1502_v40  ;;  %v3285_v4 = vld [vmem:[%s3417_s12] ss:$0 sm:$0xff] }
 0x235   : > { %v1486_v33 = vpop.f32.mrf.mxu1 }
 0x236   : > { %v1503_v28 = vadd.f32 %v1486_v33, %v1405_v6  ;;  %v1588_v22 = vadd.f32 %v2479_v8, %v1505_v26 }
 0x237   : > { %v2484_v29 = vpop.f32.mrf.mxu1 }
 0x238   : > { %v1662_v10 = vadd.f32 %v2484_v29, %v1583_v55  ;;  %v1586_v48 = vadd.f32 %v1569_v41, %v1503_v28 }
 0x239   : > { %v1629_v56 = vpop.f32.mrf.mxu1 }
 0x23a   : > { %v1677_v57 = vmul.f32 %v2256_v0, %v1662_v10  ;;  %v1660_v47 = vadd.f32 %v1629_v56, %v1581_v3 }
 0x23b   : > { %v2485_v11 = vpop.f32.mrf.mxu1 }
 0x23c   : > { %v1675_v13 = vmul.f32 %v2256_v0, %v1660_v47  ;;  %v1663_v15 = vadd.f32 %v2485_v11, %v1584_v9  ;;  %v1692_v17 = vadd.f32 %v2257_v18, %v1677_v57  ;;  %v3296_v47 = vld [vmem:[%s3414_s9] ss:$0 sm:$0xff] }
 0x23d   : > { %v1632_v23 = vpop.f32.mrf.mxu1 }
 0x23e   : > { %v1678_v19 = vmul.f32 %v2256_v0, %v1663_v15  ;;  %v1661_v20 = vadd.f32 %v1632_v23, %v1582_v21  ;;  %v1690_v32 = vadd.f32 %v2257_v18, %v1675_v13  ;;  %v1700_v42 = vmax.f32 %v1692_v17, 0.0 }
 0x23f   : > { %v2488_v30 = vpop.f32.mrf.mxu1 }
 0x240   : > { %v1693_v34 = vadd.f32 %v2257_v18, %v1678_v19  ;;  %v1676_v27 = vmul.f32 %v2256_v0, %v1661_v20  ;;  %v1666_v36 = vadd.f32 %v2488_v30, %v1587_v24  ;;  %v1698_v51 = vmax.f32 %v1690_v32, 0.0 }
 0x241   : > { %v1645_v38 = vpop.f32.mrf.mxu1 }
 0x242   : > { %v1701_v5 = vmax.f32 %v1693_v34, 0.0  ;;  %v1691_v44 = vadd.f32 %v2257_v18, %v1676_v27  ;;  %v1664_v7 = vadd.f32 %v1645_v38, %v1585_v49  ;;  %v1681_v35 = vmul.f32 %v2256_v0, %v1666_v36 }
 0x243   : > { %v2489_v37 = vpop.f32.mrf.mxu1 }
 0x244   : > { %v1707_v52 = vpack.c.bf16 %v1701_v5, %v1700_v42  ;;  %v1699_v39 = vmax.f32 %v1691_v44, 0.0  ;;  %v1679_v25 = vmul.f32 %v2256_v0, %v1664_v7  ;;  %v1667_v58 = vadd.f32 %v2489_v37, %v1588_v22 }
 0x245   : > { %v1648_v59 = vpop.f32.mrf.mxu1  ;;  %v1696_v61 = vadd.f32 %v2257_v18, %v1681_v35 }
 0x246   : > { %v1706_v31 = vpack.c.bf16 %v1699_v39, %v1698_v51  ;;  %v1665_v54 = vadd.f32 %v1648_v59, %v1586_v48  ;;  %v1682_v43 = vmul.f32 %v2256_v0, %v1667_v58  ;;  %v1694_v33 = vadd.f32 %v2257_v18, %v1679_v25 }
 0x247   : > { %v1704_v55 = vmax.f32 %v1696_v61, 0.0  ;;  %v2504_v10 = vpop.f32.mrf.mxu1 }
 0x248   : > { %v1680_v62 = vmul.f32 %v2256_v0, %v1665_v54  ;;  %2492 = vmatprep.mubr.msk.bf16.mxu0 %vm523_vm2, %v1706_v31  ;;  %v1697_v60 = vadd.f32 %v2257_v18, %v1682_v43  ;;  %v1702_v12 = vmax.f32 %v1694_v33, 0.0  ;;  %v2038_v50 = vmul.f32 %v2504_v10, %v2286_v45 }
 0x249   : > { %2493 = vmatmul.mubr.msk.bf16.vlgmr.msra.gmra.mxu0 %vm523_vm2, %v1707_v52  ;;  %v1998_v3 = vpop.f32.mrf.mxu1 }
 0x24a   : > { %v1695_v46 = vadd.f32 %v2257_v18, %v1680_v62  ;;  %v1705_v1 = vmax.f32 %v1697_v60, 0.0  ;;  %v2053_v9 = vadd.f32 %v3285_v4, %v2038_v50  ;;  %v2036_v40 = vmul.f32 %v2286_v45, %v1998_v3 }
 0x24b   : > { %v2505_v0 = vpop.f32.mrf.mxu1 }
 0x24c   : > { %v1703_v29 = vmax.f32 %v1695_v46, 0.0  ;;  %v1709_v2 = vpack.c.bf16 %v1705_v1, %v1704_v55  ;;  %v2039_v13 = vmul.f32 %v2505_v0, %v2286_v45  ;;  %v2051_v17 = vadd.f32 %v3285_v4, %v2036_v40 }
 0x24d   : > { %v2001_v53 = vpop.f32.mrf.mxu1 }
 0x24e   : > { %v1708_v63 = vpack.c.bf16 %v1703_v29, %v1702_v12  ;;  %v2037_v6 = vmul.f32 %v2286_v45, %v2001_v53  ;;  %v2054_v28 = vadd.f32 %v3285_v4, %v2039_v13 }
 0x24f   : > { %v2508_v56 = vpop.f32.mrf.mxu1 }
 0x250   : > { %2496 = vmatprep.mubr.msk.bf16.mxu0 %vm523_vm2, %v1708_v63  ;;  %v2042_v23 = vmul.f32 %v2508_v56, %v2286_v45  ;;  %v2052_v36 = vadd.f32 %v3285_v4, %v2037_v6 }
 0x251   : > { %2497 = vmatmul.mubr.msk.bf16.gmra.mxu0 %vm523_vm2, %v1709_v2  ;;  %v2014_v11 = vpop.f32.mrf.mxu1 }
 0x252   : > { %v2057_v38 = vadd.f32 %v3285_v4, %v2042_v23  ;;  %v2040_v41 = vmul.f32 %v2286_v45, %v2014_v11 }
 0x253   : > { %v2509_v26 = vpop.f32.mrf.mxu1 }
 0x254   : > { %v2043_v37 = vmul.f32 %v2509_v26, %v2286_v45  ;;  %v2055_v58 = vadd.f32 %v3285_v4, %v2040_v41 }
 0x255   : > { %v2017_v22 = vpop.f32.mrf.mxu1 }
 0x256   : > { %v2041_v59 = vmul.f32 %v2286_v45, %v2017_v22  ;;  %v2058_v62 = vadd.f32 %v3285_v4, %v2043_v37 }
 0x258   : > { %v2056_v29 = vadd.f32 %v3285_v4, %v2041_v59 }
 0x309   : > { %v2494_v57 = vpop.f32.mrf.mxu0 }
 0x30a   : > { %v1800_v18 = vmul.f32 %v2494_v57, %v3290_v14 }
 0x30b   : > { %v1760_v15 = vpop.f32.mrf.mxu0 }
 0x30c   : > { %v1815_v21 = vadd.f32 %v3296_v47, %v1800_v18  ;;  %v1798_v16 = vmul.f32 %v3290_v14, %v1760_v15 }
 0x30d   : > { %v2495_v8 = vpop.f32.mrf.mxu0 }
 0x30e   : > { %v2061_v19 = vadd.f32 %v2053_v9, %v1815_v21  ;;  %v1813_v20 = vadd.f32 %v3296_v47, %v1798_v16  ;;  %v1801_v24 = vmul.f32 %v2495_v8, %v3290_v14 }
 0x30f   : > { %v1763_v30 = vpop.f32.mrf.mxu0 }
 0x310   : > { %v2069_v49 = vmax.f32 %v2061_v19, 0.0  ;;  %v2059_v32 = vadd.f32 %v2051_v17, %v1813_v20  ;;  %v1816_v34 = vadd.f32 %v3296_v47, %v1801_v24  ;;  %v1799_v27 = vmul.f32 %v3290_v14, %v1763_v30 }
 0x311   : > { %v2498_v42 = vpop.f32.mrf.mxu0 }
 0x312   : > { %2078 = vst.msk [vmem:[%s3312_s0 + $0x10] sm:$0xff] %vm2075_vm0, %v2069_v49  ;;  %v2067_v5 = vmax.f32 %v2059_v32, 0.0  ;;  %v2062_v44 = vadd.f32 %v2054_v28, %v1816_v34  ;;  %v1814_v7 = vadd.f32 %v3296_v47, %v1799_v27  ;;  %v1804_v35 = vmul.f32 %v2498_v42, %v3290_v14 }
 0x313   : > { %v1776_v48 = vpop.f32.mrf.mxu0 }
 0x314   : > { %2076 = vst.msk [vmem:[%s3312_s0] sm:$0xff] %vm2075_vm0, %v2067_v5  ;;  %v2070_v51 = vmax.f32 %v2062_v44, 0.0  ;;  %v2060_v52 = vadd.f32 %v2052_v36, %v1814_v7  ;;  %v1819_v39 = vadd.f32 %v3296_v47, %v1804_v35  ;;  %v1802_v25 = vmul.f32 %v3290_v14, %v1776_v48 }
 0x315   : > { %v2499_v31 = vpop.f32.mrf.mxu0 }
 0x316   : > { %2079 = vst.msk [vmem:[%s3312_s0 + $0x18] sm:$0xff] %vm2075_vm0, %v2070_v51  ;;  %v2068_v54 = vmax.f32 %v2060_v52, 0.0  ;;  %v2065_v61 = vadd.f32 %v2057_v38, %v1819_v39  ;;  %v1817_v43 = vadd.f32 %v3296_v47, %v1802_v25  ;;  %v1805_v33 = vmul.f32 %v2499_v31, %v3290_v14 }
 0x317   : > { %v1779_v60 = vpop.f32.mrf.mxu0 }
 0x318   : > { %2077 = vst.msk [vmem:[%s3312_s0 + $0x8] sm:$0xff] %vm2075_vm0, %v2068_v54  ;;  %v2073_v46 = vmax.f32 %v2065_v61, 0.0  ;;  %v2063_v55 = vadd.f32 %v2055_v58, %v1817_v43  ;;  %v1820_v1 = vadd.f32 %v3296_v47, %v1805_v33  ;;  %v1803_v12 = vmul.f32 %v3290_v14, %v1779_v60 }
 0x31a   : > { %2082 = vst.msk [vmem:[%s3312_s0 + $0x30] sm:$0xff] %vm2075_vm0, %v2073_v46  ;;  %v2071_v2 = vmax.f32 %v2063_v55, 0.0  ;;  %v2066_v63 = vadd.f32 %v2058_v62, %v1820_v1  ;;  %v1818_v10 = vadd.f32 %v3296_v47, %v1803_v12 }
 0x31c   : > { %2080 = vst.msk [vmem:[%s3312_s0 + $0x20] sm:$0xff] %vm2075_vm0, %v2071_v2  ;;  %v2074_v3 = vmax.f32 %v2066_v63, 0.0  ;;  %v2064_v0 = vadd.f32 %v2056_v29, %v1818_v10 }
 0x31e   : > { %2083 = vst.msk [vmem:[%s3312_s0 + $0x38] sm:$0xff] %vm2075_vm0, %v2074_v3  ;;  %v2072_v53 = vmax.f32 %v2064_v0, 0.0 }
 0x320   : > { %2081 = vst.msk [vmem:[%s3312_s0 + $0x28] sm:$0xff] %vm2075_vm0, %v2072_v53 }
 0x321   : > { %2622 = shalt.err (!%p2619_p6)
}
 0x322   : > { %s2623_s25 = scalar_lea.hbm %s3344_s16, 1024  ;;  %s2627_s24 = scalar_lea.hbm %s3418_s13, 8192 }
 0x323   : > { %p2624_p7 = scmp.ne.s32.totalorder %s3344_s16, %s2623_s25  ;;  %p2628_p11 = scmp.lt.s32.totalorder %s3344_s16, %s3418_s13 }
 0x324   : > { %p2629_p12 = scmp.lt.s32.totalorder %s2627_s24, %s2623_s25 }
 0x325   : > { %p2625_p9 = pnand %p2624_p7, %p2829_p3 }
 0x326   : > { %p2630_p13 = por %p2629_p12, %p2628_p11 }
 0x327   : > { %p2626_p10 = pneg %p2625_p9 }
 0x329   : > { %p2631_p0 = pnand %p2630_p13, %p2626_p10 }
 0x32b   : > { %2634 = shalt.err (!%p2631_p0)
}
 0x32c   : > { %s2706_s1 = smov 128   ;;  %s2707_s28 = smov 8  }
 0x32d   : > { %2522 = dma.vmem_to_hbm [thread:$0]  (%p2829_p3), %s3346_s23, 1024, %s3344_s16, %s3354_s17, %s2706_s1, %s2706_s1, %s2707_s28  }
 0x32e PF: > { %s3447_s29 = sld [smem:[#allocation5_spill]]  ;;  %p2528_p1 = scmp.ge.s32.totalorder %s2701_s15, 2 }
 0x330   : > { %p2525_p2 = pnand %p2528_p1, %p2838_p8 }
 0x332   : > { %p2526_p4 = pneg %p2525_p2 }
 0x334   : > { %s2116_s0 = sand.u32 1, %s3447_s29  }
 0x335   : > { %s2117_s2 = scalar_lea.sflag [#allocation3], %s2116_s0 }
 0x336   : > { %2668 = dma.done.wait (%p2526_p4), %s2117_s2, 1024  }
 0x337   : > { %2670 = vsyncadd (%p2526_p4), %s2117_s2, 4294966272  ;;  %s26_s15 = sadd.s32 1, %s2701_s15   ;;  %s3448_s28 = sld [smem:[#allocation6_spill]] }
 0x338   : > { %p23_p5 = scmp.ge.s32.totalorder %s26_s15, 10   ;;  %s3449_s30 = sld [smem:[#allocation7_spill]] }
 0x339   : > { %s3450_s25 = smov %s2677_s26  ;;  %s3451_s26 = smov %s2681_s27 }
 0x33a   : > { %s3452_s27 = smov %s2847_s18  ;;  %s3453_s29 = smov %s2697_s14 }
 0x33b   : > { %s3454_s14 = smov %s3460_s19  ;;  %25 = sbr.rel (!%p23_p5) target bundleno = 9 (0x9), region = 111 }
 0x340   :  { %2122 = vsyncpa [#allocation3], 1 }
 0x341   :  { %2124 = vsyncpa [#allocation3 + $0x1], 1 }

</bundles_post_ra>
